<compile_context>
chip_gen: v7x
topology: tpu7x:2x2x1
jax: 0.10.0
libtpu: 0.0.40
codegen_flags: <defaults>
</compile_context>

<pallas_src>
import math

import jax
import jax.numpy as jnp
from jax.experimental import pallas as pl
from jax.experimental.pallas import tpu as pltpu

_VMEM_LIMIT = 48 * 1024 * 1024          # explicit scoped-VMEM cap (v5e/v6e/v7x safe)
_TILE_BUDGET = 12 * 1024 * 1024         # double-buffered block budget per grid step
_SPECTRAL_W_BUDGET = 8 * 1024 * 1024    # double-buffered spectral weight block budget

_GELU_C = 0.7978845608028654            # sqrt(2/pi)


def _gelu(x):
    # tanh-form GELU: one EUP tanh + a handful of VALU ops instead of the erf
    # polynomial + f32 divide.  Max |error| vs exact GELU ~5e-4.
    return 0.5 * x * (1.0 + jnp.tanh(_GELU_C * (x + 0.044715 * x * x * x)))


def _pick_lane_tile(S, per_lane_bytes, min_tiles=1, max_tile=8192):
    """Lane (spatial) tile: multiple of 128 (or full S), sized to a VMEM budget.

    min_tiles=2 forces >=2 spatial tiles so both v7x TensorCores get work when
    the batch axis alone cannot provide a >=2-iteration parallel axis.
    """
    cap = _TILE_BUDGET // max(per_lane_bytes, 1)
    cap = max(128, min(max_tile, cap))
    cap = (cap // 128) * 128
    if S <= cap:
        if min_tiles <= 1 or S < 256:
            return S, S
        ts = min(cap, ((S + 255) // 256) * 128)     # ~S/2 rounded up to 128
    else:
        ts = cap
    S_pad = ((S + ts - 1) // ts) * ts
    return ts, S_pad


# ---------------------------------------------------------------------------
# Fused 1x1 conv / linear kernel:  out = act(W^T @ x + b [+ skip])
# operands are (C, tile_S) -> lane-dense loads, compute and stores.
# ---------------------------------------------------------------------------
def _make_conv1x1_kernel(use_skip: bool, use_act: bool):
    def kernel(*refs):
        if use_skip:
            x_ref, w_ref, b_ref, s_ref, o_ref = refs
        else:
            x_ref, w_ref, b_ref, o_ref = refs
        # w_ref: (Cout, Cin), x_ref: (Cin, ts), b_ref: (Cout, 1)
        y = jnp.dot(w_ref[...], x_ref[...],
                    preferred_element_type=jnp.float32) + b_ref[...]
        if use_skip:
            y = y + s_ref[...]
        if use_act:
            y = _gelu(y)
        o_ref[...] = y.astype(o_ref.dtype)
    return kernel


def conv1x1(x_cf, w, b, skip=None, act=False):
    """x_cf: (B, Cin, S); w: (Cin, Cout); b: (Cout,)  ->  (B, Cout, S)."""
    B, Cin, S = x_cf.shape
    Cout = w.shape[1]
    per_lane = 8 * (Cin + Cout + (Cout if skip is not None else 0))  # f32, 2 bufs
    ts, S_pad = _pick_lane_tile(S, per_lane, min_tiles=2 if B == 1 else 1)
    if S_pad != S:
        pad = ((0, 0), (0, 0), (0, S_pad - S))
        x_cf = jnp.pad(x_cf, pad)
        if skip is not None:
            skip = jnp.pad(skip, pad)

    in_specs = [
        pl.BlockSpec((None, Cin, ts), lambda bi, sj: (bi, 0, sj)),
        pl.BlockSpec((Cout, Cin), lambda bi, sj: (0, 0)),
        pl.BlockSpec((Cout, 1), lambda bi, sj: (0, 0)),
    ]
    args = [x_cf, w.T, b.reshape(Cout, 1)]
    if skip is not None:
        in_specs.append(pl.BlockSpec((None, Cout, ts), lambda bi, sj: (bi, 0, sj)))
        args.append(skip)

    out = pl.pallas_call(
        _make_conv1x1_kernel(skip is not None, act),
        out_shape=jax.ShapeDtypeStruct((B, Cout, S_pad), jnp.float32),
        grid=(B, S_pad // ts),
        in_specs=in_specs,
        out_specs=pl.BlockSpec((None, Cout, ts), lambda bi, sj: (bi, 0, sj)),
        compiler_params=pltpu.CompilerParams(
            dimension_semantics=("parallel", "parallel"),
            vmem_limit_bytes=_VMEM_LIMIT),
    )(*args)
    return out[:, :, :S] if S_pad != S else out


# ---------------------------------------------------------------------------
# Fused MLP head:  fc2( GELU( fc1(x) ) )  -- intermediate stays on-chip.
# ---------------------------------------------------------------------------
def _mlp_head_kernel(x_ref, w1_ref, b1_ref, w2_ref, b2_ref, o_ref):
    t = jnp.dot(w1_ref[...], x_ref[...],
                preferred_element_type=jnp.float32) + b1_ref[...]
    t = _gelu(t)
    y = jnp.dot(w2_ref[...], t,
                preferred_element_type=jnp.float32) + b2_ref[...]
    o_ref[...] = y.astype(o_ref.dtype)


def mlp_head(x_cf, w1, b1, w2, b2):
    """x_cf: (B, Cin, S); w1: (Cin, F); w2: (F, O)  ->  (B, O, S)."""
    B, Cin, S = x_cf.shape
    F = w1.shape[1]
    O = w2.shape[1]
    per_lane = 8 * (Cin + O) + 4 * F          # double-buffered in/out + fc1 temp
    ts, S_pad = _pick_lane_tile(S, per_lane, min_tiles=2 if B == 1 else 1)
    if S_pad != S:
        x_cf = jnp.pad(x_cf, ((0, 0), (0, 0), (0, S_pad - S)))

    out = pl.pallas_call(
        _mlp_head_kernel,
        out_shape=jax.ShapeDtypeStruct((B, O, S_pad), jnp.float32),
        grid=(B, S_pad // ts),
        in_specs=[
            pl.BlockSpec((None, Cin, ts), lambda bi, sj: (bi, 0, sj)),
            pl.BlockSpec((F, Cin), lambda bi, sj: (0, 0)),
            pl.BlockSpec((F, 1), lambda bi, sj: (0, 0)),
            pl.BlockSpec((O, F), lambda bi, sj: (0, 0)),
            pl.BlockSpec((O, 1), lambda bi, sj: (0, 0)),
        ],
        out_specs=pl.BlockSpec((None, O, ts), lambda bi, sj: (bi, 0, sj)),
        compiler_params=pltpu.CompilerParams(
            dimension_semantics=("parallel", "parallel"),
            vmem_limit_bytes=_VMEM_LIMIT),
    )(x_cf, w1.T, b1.reshape(F, 1), w2.T, b2.reshape(O, 1))
    return out[:, :, :S] if S_pad != S else out


# ---------------------------------------------------------------------------
# SpectralConv3d: complex per-mode channel mixing.
#
# The 4 FFT corners are folded into the lane axis (L = 4*M) so vregs/stores
# are lane-dense even for small mode counts, and the full (small) batch is
# folded into the block so each weight block is streamed from HBM once per
# Cin-block instead of once per sample.  Grid = (B-chunks, Cout-blocks,
# lane-blocks, Cin-blocks); the (bb, co, lL) output block is the VMEM-resident
# accumulator over the Cin ("arbitrary", innermost) axis.
# ---------------------------------------------------------------------------
def _spectral_mix_kernel(xr_ref, xi_ref, wr_ref, wi_ref, or_ref, oi_ref):
    ci = xr_ref.shape[1]

    @pl.when(pl.program_id(3) == 0)
    def _init():
        or_ref[...] = jnp.zeros_like(or_ref)
        oi_ref[...] = jnp.zeros_like(oi_ref)

    xr_all = xr_ref[...]                      # (bb, ci, lL)
    xi_all = xi_ref[...]
    accr = or_ref[...]                        # (bb, co, lL) resident accumulator
    acci = oi_ref[...]
    for i in range(ci):                       # static unroll; no (ci,co,L) temp
        xr = xr_all[:, i:i + 1, :]            # (bb, 1, lL)
        xi = xi_all[:, i:i + 1, :]
        wr = wr_ref[i][None, :, :]            # (1, co, lL)
        wi = wi_ref[i][None, :, :]
        accr = accr + (xr * wr - xi * wi)     # complex MAC on the VPU
        acci = acci + (xr * wi + xi * wr)
    or_ref[...] = accr
    oi_ref[...] = acci


def _spectral_blocks(B, Cin, Cout, L):
    """Pick (bb, ci, co, lL) blocks for spectral_mix under a VMEM budget."""
    # lane block over L = 4*M (corners folded into lanes)
    if L % 128 == 0 and L > 1024:
        lL = 1024
        while L % lL != 0:
            lL //= 2
    else:
        lL = L
    # Cout block: give the megacore a >=2-iteration parallel axis when possible
    co = Cout // 2 if (Cout % 16 == 0) else Cout
    # Cin block: multiple of 8 dividing Cin (or full Cin), capped so the
    # double-buffered real+imag weight blocks stay under the budget (v7x VMEM)
    per_ci = co * lL * 4 * 2 * 2              # bytes per unit of ci
    ci_cap = max(8, min(32, _SPECTRAL_W_BUDGET // per_ci))
    if Cin % 8 == 0:
        ci = 8
        while ci * 2 <= min(Cin, ci_cap) and Cin % (ci * 2) == 0:
            ci *= 2
    else:
        ci = Cin
    # batch block: fold the whole (small) batch -> weights streamed ~once
    bb = B
    for d in range(min(B, 8), 0, -1):
        if B % d == 0:
            bb = d
            break
    return bb, ci, co, lL


def spectral_mix(xr, xi, wr, wi):
    """xr/xi: (B, Cin, L); wr/wi: (Cin, Cout, L)  ->  2x (B, Cout, L)."""
    B, Cin, L = xr.shape
    Cout = wr.shape[1]
    bb, ci, co, lL = _spectral_blocks(B, Cin, Cout, L)
    grid = (B // bb, Cout // co, L // lL, Cin // ci)

    return pl.pallas_call(
        _spectral_mix_kernel,
        out_shape=(jax.ShapeDtypeStruct((B, Cout, L), jnp.float32),
                   jax.ShapeDtypeStruct((B, Cout, L), jnp.float32)),
        grid=grid,
        in_specs=[
            pl.BlockSpec((bb, ci, lL), lambda b, j, li, k: (b, k, li)),
            pl.BlockSpec((bb, ci, lL), lambda b, j, li, k: (b, k, li)),
            pl.BlockSpec((ci, co, lL), lambda b, j, li, k: (k, j, li)),
            pl.BlockSpec((ci, co, lL), lambda b, j, li, k: (k, j, li)),
        ],
        out_specs=(pl.BlockSpec((bb, co, lL), lambda b, j, li, k: (b, j, li)),
                   pl.BlockSpec((bb, co, lL), lambda b, j, li, k: (b, j, li))),
        compiler_params=pltpu.CompilerParams(
            dimension_semantics=("parallel", "parallel", "parallel", "arbitrary"),
            vmem_limit_bytes=_VMEM_LIMIT),
    )(xr, xi, wr, wi)


def spectral_conv3d(h5, wr, wi, m1, m2, m3):
    """h5: (B, Cin, X, Y, Z); wr/wi: (4, Cin, Cout, m1, m2, m3) -> (B, Cout, S)."""
    B, Cin, X, Y, Z = h5.shape
    Cout = wr.shape[2]
    M = m1 * m2 * m3
    # TODO(synk): replace full rfftn/irfftn + zero-padded scatter with
    # mode-truncated DFT matmuls on the MXU fused around spectral_mix.
    x_ft = jnp.fft.rfftn(h5, axes=(2, 3, 4))             # (B, Cin, X, Y, Z//2+1)
    corners = [
        x_ft[:, :, :m1, :m2, :m3],
        x_ft[:, :, X - m1:, :m2, :m3],
        x_ft[:, :, :m1, Y - m2:, :m3],
        x_ft[:, :, X - m1:, Y - m2:, :m3],
    ]
    # fold the corner axis into the lane axis: (B, Cin, 4*M)
    xc = jnp.concatenate([c.reshape(B, Cin, M) for c in corners], axis=-1)
    # weights: (4, Cin, Cout, M) -> (Cin, Cout, 4*M), matching the lane order
    wfr = jnp.moveaxis(wr.reshape(4, Cin, Cout, M), 0, 2).reshape(Cin, Cout, 4 * M)
    wfi = jnp.moveaxis(wi.reshape(4, Cin, Cout, M), 0, 2).reshape(Cin, Cout, 4 * M)

    our, oui = spectral_mix(jnp.real(xc), jnp.imag(xc), wfr, wfi)
    o = jax.lax.complex(our, oui).reshape(B, Cout, 4, M)
    o = jnp.moveaxis(o, 2, 0).reshape(4, B, Cout, m1, m2, m3)

    out_ft = jnp.zeros((B, Cout, X, Y, Z // 2 + 1), jnp.complex64)
    out_ft = out_ft.at[:, :, :m1, :m2, :m3].set(o[0])
    out_ft = out_ft.at[:, :, X - m1:, :m2, :m3].set(o[1])
    out_ft = out_ft.at[:, :, :m1, Y - m2:, :m3].set(o[2])
    out_ft = out_ft.at[:, :, X - m1:, Y - m2:, :m3].set(o[3])
    out = jnp.fft.irfftn(out_ft, s=(X, Y, Z), axes=(2, 3, 4))
    return out.reshape(B, Cout, X * Y * Z)


# ---------------------------------------------------------------------------
# FNN3d forward
# ---------------------------------------------------------------------------
def fnn3d_forward(x, params, cfg):
    B, X, Y, Z, in_dim = x.shape
    S = X * Y * Z
    layers = cfg["layers"]
    n_layers = len(layers) - 1

    # channels-last -> channels-first, spatially flattened (one small transpose)
    h = jnp.moveaxis(x, -1, 1).reshape(B, in_dim, S)
    h = conv1x1(h, params["fc0_w"], params["fc0_b"])                 # (B, C0, S)

    for i in range(n_layers):
        m1, m2, m3 = cfg["modes1"][i], cfg["modes2"][i], cfg["modes3"][i]
        x1 = spectral_conv3d(h.reshape(B, layers[i], X, Y, Z),
                             params[f"sp{i}_wr"], params[f"sp{i}_wi"],
                             m1, m2, m3)                             # (B, C_{i+1}, S)
        # fused: 1x1 conv + bias + spectral skip + (GELU except last layer)
        h = conv1x1(h, params[f"w{i}_w"], params[f"w{i}_b"],
                    skip=x1, act=(i != n_layers - 1))                # (B, C_{i+1}, S)

    # fused fc1 -> GELU -> fc2 (single HBM read of h, single HBM write of out)
    out = mlp_head(h, params["fc1_w"], params["fc1_b"],
                   params["fc2_w"], params["fc2_b"])                 # (B, out_dim, S)
    return jnp.moveaxis(out.reshape(B, cfg["out_dim"], X, Y, Z), 1, -1)


# ---------------------------------------------------------------------------
# Pure-JAX reference (for correctness check) + parameter init
# ---------------------------------------------------------------------------
def reference_forward(x, params, cfg):
    gelu = lambda v: jax.nn.gelu(v, approximate=False)
    layers = cfg["layers"]
    B, X, Y, Z, _ = x.shape
    n_layers = len(layers) - 1
    h = x @ params["fc0_w"] + params["fc0_b"]
    for i in range(n_layers):
        m1, m2, m3 = cfg["modes1"][i], cfg["modes2"][i], cfg["modes3"][i]
        w = params[f"sp{i}_wr"] + 1j * params[f"sp{i}_wi"]
        x_ft = jnp.fft.rfftn(h, axes=(1, 2, 3))
        Cout = layers[i + 1]
        out_ft = jnp.zeros((B, X, Y, Z // 2 + 1, Cout), jnp.complex64)
        mix = lambda c, wk: jnp.einsum("bxyzi,ioxyz->bxyzo", c, wk)
        out_ft = out_ft.at[:, :m1, :m2, :m3, :].set(mix(x_ft[:, :m1, :m2, :m3, :], w[0]))
        out_ft = out_ft.at[:, X - m1:, :m2, :m3, :].set(mix(x_ft[:, X - m1:, :m2, :m3, :], w[1]))
        out_ft = out_ft.at[:, :m1, Y - m2:, :m3, :].set(mix(x_ft[:, :m1, Y - m2:, :m3, :], w[2]))
        out_ft = out_ft.at[:, X - m1:, Y - m2:, :m3, :].set(mix(x_ft[:, X - m1:, Y - m2:, :m3, :], w[3]))
        x1 = jnp.fft.irfftn(out_ft, s=(X, Y, Z), axes=(1, 2, 3))
        x2 = h @ params[f"w{i}_w"] + params[f"w{i}_b"]
        h = x1 + x2
        if i != n_layers - 1:
            h = gelu(h)
    h = gelu(h @ params["fc1_w"] + params["fc1_b"])
    return h @ params["fc2_w"] + params["fc2_b"]


def init_params(key, cfg):
    layers = cfg["layers"]
    params = {}

    def dense(k, cin, cout):
        k1, k2 = jax.random.split(k)
        bound = 1.0 / math.sqrt(cin)
        w = jax.random.uniform(k1, (cin, cout), jnp.float32, -bound, bound)
        b = jax.random.uniform(k2, (cout,), jnp.float32, -bound, bound)
        return w, b

    keys = jax.random.split(key, 16)
    params["fc0_w"], params["fc0_b"] = dense(keys[0], cfg["in_dim"], layers[0])
    for i in range(len(layers) - 1):
        cin, cout = layers[i], layers[i + 1]
        scale = 1.0 / (cin * cout)
        m1, m2, m3 = cfg["modes1"][i], cfg["modes2"][i], cfg["modes3"][i]
        kr, ki, kw = jax.random.split(keys[1 + i], 3)
        params[f"sp{i}_wr"] = scale * jax.random.uniform(
            kr, (4, cin, cout, m1, m2, m3), jnp.float32)
        params[f"sp{i}_wi"] = scale * jax.random.uniform(
            ki, (4, cin, cout, m1, m2, m3), jnp.float32)
        params[f"w{i}_w"], params[f"w{i}_b"] = dense(kw, cin, cout)
    params["fc1_w"], params["fc1_b"] = dense(keys[10], layers[-1], cfg["fc_dim"])
    params["fc2_w"], params["fc2_b"] = dense(keys[11], cfg["fc_dim"], cfg["out_dim"])
    return params


if __name__ == "__main__":
    cfg = dict(modes1=[2, 2, 2], modes2=[2, 2, 2], modes3=[2, 2, 2],
               layers=[8, 8, 8, 8], fc_dim=16, in_dim=4, out_dim=1)
    key = jax.random.PRNGKey(0)
    kx, kp = jax.random.split(key)
    x = jax.random.normal(kx, (2, 8, 8, 8, 4), jnp.float32)
    params = init_params(kp, cfg)

    fwd = jax.jit(lambda xx, pp: fnn3d_forward(xx, pp, cfg))
    out = jax.block_until_ready(fwd(x, params))
    assert out.shape == (2, 8, 8, 8, 1)

    ref = jax.block_until_ready(reference_forward(x, params, cfg))
    err = float(jnp.max(jnp.abs(out - ref)))
    assert err < 1e-2, f"mismatch vs reference: {err}"
    print("KERNEL_OK")
</pallas_src>

<mosaic_0001>
module attributes {stable_mosaic.version = 11 : i64} {
  func.func @kernel(%arg0: i32, %arg1: i32, %arg2: memref<1x4x512xf32, #tpu.memory_space<vmem>>, %arg3: memref<8x4xf32, #tpu.memory_space<vmem>>, %arg4: memref<8x1xf32, #tpu.memory_space<vmem>>, %arg5: memref<1x8x512xf32, #tpu.memory_space<vmem>>) attributes {dimension_semantics = [#tpu.dimension_semantics<parallel>, #tpu.dimension_semantics<parallel>], iteration_bounds = array<i64: 2, 1>, scalar_prefetch = 0 : i64, scratch_operands = 0 : i64, tpu.core_type = #tpu.core_type<tc>, window_params = [{transform_indices = @transform_0, window_bounds = array<i64: 1, 4, 512>}, {pipeline_mode = #tpu.pipeline_mode<synchronous>, transform_indices = @transform_1, window_bounds = array<i64: 8, 4>}, {pipeline_mode = #tpu.pipeline_mode<synchronous>, transform_indices = @transform_2, window_bounds = array<i64: 8, 1>}, {transform_indices = @transform_3, window_bounds = array<i64: 1, 8, 512>}]} {
    %c0 = arith.constant 0 : index
    %c0_0 = arith.constant 0 : index
    %0 = vector.load %arg3[%c0, %c0_0] : memref<8x4xf32, #tpu.memory_space<vmem>>, vector<8x4xf32>
    %c0_1 = arith.constant 0 : index
    %c0_2 = arith.constant 0 : index
    %c0_3 = arith.constant 0 : index
    %1 = vector.load %arg2[%c0_1, %c0_2, %c0_3] : memref<1x4x512xf32, #tpu.memory_space<vmem>>, vector<1x4x512xf32>
    %2 = vector.shape_cast %1 : vector<1x4x512xf32> to vector<4x512xf32>
    %cst = arith.constant dense<0.000000e+00> : vector<8x512xf32>
    %3 = tpu.matmul %0, %2, %cst {dimension_numbers = #tpu.dot_dimension_numbers<[1], [0], [0], [1], [0, 0, 1, 1], [], []>} : vector<8x4xf32>, vector<4x512xf32>, vector<8x512xf32> -> vector<8x512xf32>
    %c0_4 = arith.constant 0 : index
    %c0_5 = arith.constant 0 : index
    %4 = vector.load %arg4[%c0_4, %c0_5] : memref<8x1xf32, #tpu.memory_space<vmem>>, vector<8x1xf32>
    %5 = vector.broadcast %4 : vector<8x1xf32> to vector<8x512xf32>
    %6 = arith.addf %3, %5 : vector<8x512xf32>
    %c0_6 = arith.constant 0 : index
    %c0_7 = arith.constant 0 : index
    %c0_8 = arith.constant 0 : index
    %7 = vector.load %arg5[%c0_6, %c0_7, %c0_8] : memref<1x8x512xf32, #tpu.memory_space<vmem>>, vector<1x8x512xf32>
    %8 = vector.shape_cast %7 : vector<1x8x512xf32> to vector<8x512xf32>
    %9 = vector.shape_cast %6 : vector<8x512xf32> to vector<1x8x512xf32>
    tpu.vector_store %arg5[%c0_6, %c0_7, %c0_8], %9 {strides = array<i32>} : memref<1x8x512xf32, #tpu.memory_space<vmem>>, vector<1x8x512xf32>,
    return
  }
  func.func @transform_0(%arg0: i32, %arg1: i32) -> (i32, i32, i32) {
    %c0_i32 = arith.constant 0 : i32
    %c0_i32_0 = arith.constant 0 : i32
    return %arg0, %c0_i32, %arg1 : i32, i32, i32
  }
  func.func @transform_1(%arg0: i32, %arg1: i32) -> (i32, i32) {
    %c0_i32 = arith.constant 0 : i32
    %c0_i32_0 = arith.constant 0 : i32
    %c0_i32_1 = arith.constant 0 : i32
    return %c0_i32, %c0_i32_0 : i32, i32
  }
  func.func @transform_2(%arg0: i32, %arg1: i32) -> (i32, i32) {
    %c0_i32 = arith.constant 0 : i32
    %c0_i32_0 = arith.constant 0 : i32
    %c0_i32_1 = arith.constant 0 : i32
    return %c0_i32, %c0_i32_0 : i32, i32
  }
  func.func @transform_3(%arg0: i32, %arg1: i32) -> (i32, i32, i32) {
    %c0_i32 = arith.constant 0 : i32
    %c0_i32_0 = arith.constant 0 : i32
    return %arg0, %c0_i32, %arg1 : i32, i32, i32
  }
}

module attributes {stable_mosaic.version = 11 : i64} {
  func.func @_spectral_mix_kernel(%arg0: i32, %arg1: i32, %arg2: i32, %arg3: i32, %arg4: memref<2x8x32xf32, #tpu.memory_space<vmem>>, %arg5: memref<2x8x32xf32, #tpu.memory_space<vmem>>, %arg6: memref<8x8x32xf32, #tpu.memory_space<vmem>>, %arg7: memref<8x8x32xf32, #tpu.memory_space<vmem>>, %arg8: memref<2x8x32xf32, #tpu.memory_space<vmem>>, %arg9: memref<2x8x32xf32, #tpu.memory_space<vmem>>) attributes {dimension_semantics = [#tpu.dimension_semantics<parallel>, #tpu.dimension_semantics<parallel>, #tpu.dimension_semantics<parallel>, #tpu.dimension_semantics<arbitrary>], iteration_bounds = array<i64: 1, 1, 1, 1>, scalar_prefetch = 0 : i64, scratch_operands = 0 : i64, tpu.core_type = #tpu.core_type<tc>, window_params = [{transform_indices = @transform_0, window_bounds = array<i64: 2, 8, 32>}, {transform_indices = @transform_1, window_bounds = array<i64: 2, 8, 32>}, {transform_indices = @transform_2, window_bounds = array<i64: 8, 8, 32>}, {transform_indices = @transform_3, window_bounds = array<i64: 8, 8, 32>}, {transform_indices = @transform_4, window_bounds = array<i64: 2, 8, 32>}, {transform_indices = @transform_5, window_bounds = array<i64: 2, 8, 32>}]} {
    %c0_i32 = arith.constant 0 : i32
    %0 = arith.cmpi eq, %arg3, %c0_i32 : i32
    %1 = arith.extui %0 : i1 to i32
    %c0_i32_0 = arith.constant 0 : i32
    %2 = arith.cmpi ne, %1, %c0_i32_0 : i32
    scf.if %2 {
      %cst = arith.constant 0.000000e+00 : f32
      %201 = vector.broadcast %cst : f32 to vector<2x8x32xf32>
      %c0_59 = arith.constant 0 : index
      %c0_60 = arith.constant 0 : index
      %c0_61 = arith.constant 0 : index
      %202 = vector.load %arg8[%c0_59, %c0_60, %c0_61] : memref<2x8x32xf32, #tpu.memory_space<vmem>>, vector<2x8x32xf32>
      tpu.vector_store %arg8[%c0_59, %c0_60, %c0_61], %201 {strides = array<i32>} : memref<2x8x32xf32, #tpu.memory_space<vmem>>, vector<2x8x32xf32>,
      %cst_62 = arith.constant 0.000000e+00 : f32
      %203 = vector.broadcast %cst_62 : f32 to vector<2x8x32xf32>
      %c0_63 = arith.constant 0 : index
      %c0_64 = arith.constant 0 : index
      %c0_65 = arith.constant 0 : index
      %204 = vector.load %arg9[%c0_63, %c0_64, %c0_65] : memref<2x8x32xf32, #tpu.memory_space<vmem>>, vector<2x8x32xf32>
      tpu.vector_store %arg9[%c0_63, %c0_64, %c0_65], %203 {strides = array<i32>} : memref<2x8x32xf32, #tpu.memory_space<vmem>>, vector<2x8x32xf32>,
    } else {
    }
    %c0 = arith.constant 0 : index
    %c0_1 = arith.constant 0 : index
    %c0_2 = arith.constant 0 : index
    %3 = vector.load %arg4[%c0, %c0_1, %c0_2] : memref<2x8x32xf32, #tpu.memory_space<vmem>>, vector<2x8x32xf32>
    %c0_3 = arith.constant 0 : index
    %c0_4 = arith.constant 0 : index
    %c0_5 = arith.constant 0 : index
    %4 = vector.load %arg5[%c0_3, %c0_4, %c0_5] : memref<2x8x32xf32, #tpu.memory_space<vmem>>, vector<2x8x32xf32>
    %c0_6 = arith.constant 0 : index
    %c0_7 = arith.constant 0 : index
    %c0_8 = arith.constant 0 : index
    %5 = vector.load %arg8[%c0_6, %c0_7, %c0_8] : memref<2x8x32xf32, #tpu.memory_space<vmem>>, vector<2x8x32xf32>
    %c0_9 = arith.constant 0 : index
    %c0_10 = arith.constant 0 : index
    %c0_11 = arith.constant 0 : index
    %6 = vector.load %arg9[%c0_9, %c0_10, %c0_11] : memref<2x8x32xf32, #tpu.memory_space<vmem>>, vector<2x8x32xf32>
    %7 = vector.extract_strided_slice %3 {offsets = [0, 0, 0], sizes = [2, 1, 32], strides = [1, 1, 1]} : vector<2x8x32xf32> to vector<2x1x32xf32>
    %8 = vector.extract_strided_slice %4 {offsets = [0, 0, 0], sizes = [2, 1, 32], strides = [1, 1, 1]} : vector<2x8x32xf32> to vector<2x1x32xf32>
    %c0_12 = arith.constant 0 : index
    %c0_13 = arith.constant 0 : index
    %c0_14 = arith.constant 0 : index
    %9 = vector.load %arg6[%c0_12, %c0_13, %c0_14] : memref<8x8x32xf32, #tpu.memory_space<vmem>>, vector<1x8x32xf32>
    %10 = vector.shape_cast %9 : vector<1x8x32xf32> to vector<8x32xf32>
    %11 = vector.shape_cast %10 : vector<8x32xf32> to vector<1x8x32xf32>
    %c0_15 = arith.constant 0 : index
    %c0_16 = arith.constant 0 : index
    %c0_17 = arith.constant 0 : index
    %12 = vector.load %arg7[%c0_15, %c0_16, %c0_17] : memref<8x8x32xf32, #tpu.memory_space<vmem>>, vector<1x8x32xf32>
    %13 = vector.shape_cast %12 : vector<1x8x32xf32> to vector<8x32xf32>
    %14 = vector.shape_cast %13 : vector<8x32xf32> to vector<1x8x32xf32>
    %15 = vector.broadcast %7 : vector<2x1x32xf32> to vector<2x8x32xf32>
    %16 = vector.broadcast %11 : vector<1x8x32xf32> to vector<2x8x32xf32>
    %17 = arith.mulf %15, %16 : vector<2x8x32xf32>
    %18 = vector.broadcast %8 : vector<2x1x32xf32> to vector<2x8x32xf32>
    %19 = vector.broadcast %14 : vector<1x8x32xf32> to vector<2x8x32xf32>
    %20 = arith.mulf %18, %19 : vector<2x8x32xf32>
    %21 = arith.subf %17, %20 : vector<2x8x32xf32>
    %22 = arith.addf %5, %21 : vector<2x8x32xf32>
    %23 = vector.broadcast %7 : vector<2x1x32xf32> to vector<2x8x32xf32>
    %24 = vector.broadcast %14 : vector<1x8x32xf32> to vector<2x8x32xf32>
    %25 = arith.mulf %23, %24 : vector<2x8x32xf32>
    %26 = vector.broadcast %8 : vector<2x1x32xf32> to vector<2x8x32xf32>
    %27 = vector.broadcast %11 : vector<1x8x32xf32> to vector<2x8x32xf32>
    %28 = arith.mulf %26, %27 : vector<2x8x32xf32>
    %29 = arith.addf %25, %28 : vector<2x8x32xf32>
    %30 = arith.addf %6, %29 : vector<2x8x32xf32>
    %31 = vector.extract_strided_slice %3 {offsets = [0, 1, 0], sizes = [2, 1, 32], strides = [1, 1, 1]} : vector<2x8x32xf32> to vector<2x1x32xf32>
    %32 = vector.extract_strided_slice %4 {offsets = [0, 1, 0], sizes = [2, 1, 32], strides = [1, 1, 1]} : vector<2x8x32xf32> to vector<2x1x32xf32>
    %c1 = arith.constant 1 : index
    %c0_18 = arith.constant 0 : index
    %c0_19 = arith.constant 0 : index
    %33 = vector.load %arg6[%c1, %c0_18, %c0_19] : memref<8x8x32xf32, #tpu.memory_space<vmem>>, vector<1x8x32xf32>
    %34 = vector.shape_cast %33 : vector<1x8x32xf32> to vector<8x32xf32>
    %35 = vector.shape_cast %34 : vector<8x32xf32> to vector<1x8x32xf32>
    %c1_20 = arith.constant 1 : index
    %c0_21 = arith.constant 0 : index
    %c0_22 = arith.constant 0 : index
    %36 = vector.load %arg7[%c1_20, %c0_21, %c0_22] : memref<8x8x32xf32, #tpu.memory_space<vmem>>, vector<1x8x32xf32>
    %37 = vector.shape_cast %36 : vector<1x8x32xf32> to vector<8x32xf32>
    %38 = vector.shape_cast %37 : vector<8x32xf32> to vector<1x8x32xf32>
    %39 = vector.broadcast %31 : vector<2x1x32xf32> to vector<2x8x32xf32>
    %40 = vector.broadcast %35 : vector<1x8x32xf32> to vector<2x8x32xf32>
    %41 = arith.mulf %39, %40 : vector<2x8x32xf32>
    %42 = vector.broadcast %32 : vector<2x1x32xf32> to vector<2x8x32xf32>
    %43 = vector.broadcast %38 : vector<1x8x32xf32> to vector<2x8x32xf32>
    %44 = arith.mulf %42, %43 : vector<2x8x32xf32>
    %45 = arith.subf %41, %44 : vector<2x8x32xf32>
    %46 = arith.addf %22, %45 : vector<2x8x32xf32>
    %47 = vector.broadcast %31 : vector<2x1x32xf32> to vector<2x8x32xf32>
    %48 = vector.broadcast %38 : vector<1x8x32xf32> to vector<2x8x32xf32>
    %49 = arith.mulf %47, %48 : vector<2x8x32xf32>
    %50 = vector.broadcast %32 : vector<2x1x32xf32> to vector<2x8x32xf32>
    %51 = vector.broadcast %35 : vector<1x8x32xf32> to vector<2x8x32xf32>
    %52 = arith.mulf %50, %51 : vector<2x8x32xf32>
    %53 = arith.addf %49, %52 : vector<2x8x32xf32>
    %54 = arith.addf %30, %53 : vector<2x8x32xf32>
    %55 = vector.extract_strided_slice %3 {offsets = [0, 2, 0], sizes = [2, 1, 32], strides = [1, 1, 1]} : vector<2x8x32xf32> to vector<2x1x32xf32>
    %56 = vector.extract_strided_slice %4 {offsets = [0, 2, 0], sizes = [2, 1, 32], strides = [1, 1, 1]} : vector<2x8x32xf32> to vector<2x1x32xf32>
    %c2 = arith.constant 2 : index
    %c0_23 = arith.constant 0 : index
    %c0_24 = arith.constant 0 : index
    %57 = vector.load %arg6[%c2, %c0_23, %c0_24] : memref<8x8x32xf32, #tpu.memory_space<vmem>>, vector<1x8x32xf32>
    %58 = vector.shape_cast %57 : vector<1x8x32xf32> to vector<8x32xf32>
    %59 = vector.shape_cast %58 : vector<8x32xf32> to vector<1x8x32xf32>
    %c2_25 = arith.constant 2 : index
    %c0_26 = arith.constant 0 : index
    %c0_27 = arith.constant 0 : index
    %60 = vector.load %arg7[%c2_25, %c0_26, %c0_27] : memref<8x8x32xf32, #tpu.memory_space<vmem>>, vector<1x8x32xf32>
    %61 = vector.shape_cast %60 : vector<1x8x32xf32> to vector<8x32xf32>
    %62 = vector.shape_cast %61 : vector<8x32xf32> to vector<1x8x32xf32>
    %63 = vector.broadcast %55 : vector<2x1x32xf32> to vector<2x8x32xf32>
    %64 = vector.broadcast %59 : vector<1x8x32xf32> to vector<2x8x32xf32>
    %65 = arith.mulf %63, %64 : vector<2x8x32xf32>
    %66 = vector.broadcast %56 : vector<2x1x32xf32> to vector<2x8x32xf32>
    %67 = vector.broadcast %62 : vector<1x8x32xf32> to vector<2x8x32xf32>
    %68 = arith.mulf %66, %67 : vector<2x8x32xf32>
    %69 = arith.subf %65, %68 : vector<2x8x32xf32>
    %70 = arith.addf %46, %69 : vector<2x8x32xf32>
    %71 = vector.broadcast %55 : vector<2x1x32xf32> to vector<2x8x32xf32>
    %72 = vector.broadcast %62 : vector<1x8x32xf32> to vector<2x8x32xf32>
    %73 = arith.mulf %71, %72 : vector<2x8x32xf32>
    %74 = vector.broadcast %56 : vector<2x1x32xf32> to vector<2x8x32xf32>
    %75 = vector.broadcast %59 : vector<1x8x32xf32> to vector<2x8x32xf32>
    %76 = arith.mulf %74, %75 : vector<2x8x32xf32>
    %77 = arith.addf %73, %76 : vector<2x8x32xf32>
    %78 = arith.addf %54, %77 : vector<2x8x32xf32>
    %79 = vector.extract_strided_slice %3 {offsets = [0, 3, 0], sizes = [2, 1, 32], strides = [1, 1, 1]} : vector<2x8x32xf32> to vector<2x1x32xf32>
    %80 = vector.extract_strided_slice %4 {offsets = [0, 3, 0], sizes = [2, 1, 32], strides = [1, 1, 1]} : vector<2x8x32xf32> to vector<2x1x32xf32>
    %c3 = arith.constant 3 : index
    %c0_28 = arith.constant 0 : index
    %c0_29 = arith.constant 0 : index
    %81 = vector.load %arg6[%c3, %c0_28, %c0_29] : memref<8x8x32xf32, #tpu.memory_space<vmem>>, vector<1x8x32xf32>
    %82 = vector.shape_cast %81 : vector<1x8x32xf32> to vector<8x32xf32>
    %83 = vector.shape_cast %82 : vector<8x32xf32> to vector<1x8x32xf32>
    %c3_30 = arith.constant 3 : index
    %c0_31 = arith.constant 0 : index
    %c0_32 = arith.constant 0 : index
    %84 = vector.load %arg7[%c3_30, %c0_31, %c0_32] : memref<8x8x32xf32, #tpu.memory_space<vmem>>, vector<1x8x32xf32>
    %85 = vector.shape_cast %84 : vector<1x8x32xf32> to vector<8x32xf32>
    %86 = vector.shape_cast %85 : vector<8x32xf32> to vector<1x8x32xf32>
    %87 = vector.broadcast %79 : vector<2x1x32xf32> to vector<2x8x32xf32>
    %88 = vector.broadcast %83 : vector<1x8x32xf32> to vector<2x8x32xf32>
    %89 = arith.mulf %87, %88 : vector<2x8x32xf32>
    %90 = vector.broadcast %80 : vector<2x1x32xf32> to vector<2x8x32xf32>
    %91 = vector.broadcast %86 : vector<1x8x32xf32> to vector<2x8x32xf32>
    %92 = arith.mulf %90, %91 : vector<2x8x32xf32>
    %93 = arith.subf %89, %92 : vector<2x8x32xf32>
    %94 = arith.addf %70, %93 : vector<2x8x32xf32>
    %95 = vector.broadcast %79 : vector<2x1x32xf32> to vector<2x8x32xf32>
    %96 = vector.broadcast %86 : vector<1x8x32xf32> to vector<2x8x32xf32>
    %97 = arith.mulf %95, %96 : vector<2x8x32xf32>
    %98 = vector.broadcast %80 : vector<2x1x32xf32> to vector<2x8x32xf32>
    %99 = vector.broadcast %83 : vector<1x8x32xf32> to vector<2x8x32xf32>
    %100 = arith.mulf %98, %99 : vector<2x8x32xf32>
    %101 = arith.addf %97, %100 : vector<2x8x32xf32>
    %102 = arith.addf %78, %101 : vector<2x8x32xf32>
    %103 = vector.extract_strided_slice %3 {offsets = [0, 4, 0], sizes = [2, 1, 32], strides = [1, 1, 1]} : vector<2x8x32xf32> to vector<2x1x32xf32>
    %104 = vector.extract_strided_slice %4 {offsets = [0, 4, 0], sizes = [2, 1, 32], strides = [1, 1, 1]} : vector<2x8x32xf32> to vector<2x1x32xf32>
    %c4 = arith.constant 4 : index
    %c0_33 = arith.constant 0 : index
    %c0_34 = arith.constant 0 : index
    %105 = vector.load %arg6[%c4, %c0_33, %c0_34] : memref<8x8x32xf32, #tpu.memory_space<vmem>>, vector<1x8x32xf32>
    %106 = vector.shape_cast %105 : vector<1x8x32xf32> to vector<8x32xf32>
    %107 = vector.shape_cast %106 : vector<8x32xf32> to vector<1x8x32xf32>
    %c4_35 = arith.constant 4 : index
    %c0_36 = arith.constant 0 : index
    %c0_37 = arith.constant 0 : index
    %108 = vector.load %arg7[%c4_35, %c0_36, %c0_37] : memref<8x8x32xf32, #tpu.memory_space<vmem>>, vector<1x8x32xf32>
    %109 = vector.shape_cast %108 : vector<1x8x32xf32> to vector<8x32xf32>
    %110 = vector.shape_cast %109 : vector<8x32xf32> to vector<1x8x32xf32>
    %111 = vector.broadcast %103 : vector<2x1x32xf32> to vector<2x8x32xf32>
    %112 = vector.broadcast %107 : vector<1x8x32xf32> to vector<2x8x32xf32>
    %113 = arith.mulf %111, %112 : vector<2x8x32xf32>
    %114 = vector.broadcast %104 : vector<2x1x32xf32> to vector<2x8x32xf32>
    %115 = vector.broadcast %110 : vector<1x8x32xf32> to vector<2x8x32xf32>
    %116 = arith.mulf %114, %115 : vector<2x8x32xf32>
    %117 = arith.subf %113, %116 : vector<2x8x32xf32>
    %118 = arith.addf %94, %117 : vector<2x8x32xf32>
    %119 = vector.broadcast %103 : vector<2x1x32xf32> to vector<2x8x32xf32>
    %120 = vector.broadcast %110 : vector<1x8x32xf32> to vector<2x8x32xf32>
    %121 = arith.mulf %119, %120 : vector<2x8x32xf32>
    %122 = vector.broadcast %104 : vector<2x1x32xf32> to vector<2x8x32xf32>
    %123 = vector.broadcast %107 : vector<1x8x32xf32> to vector<2x8x32xf32>
    %124 = arith.mulf %122, %123 : vector<2x8x32xf32>
    %125 = arith.addf %121, %124 : vector<2x8x32xf32>
    %126 = arith.addf %102, %125 : vector<2x8x32xf32>
    %127 = vector.extract_strided_slice %3 {offsets = [0, 5, 0], sizes = [2, 1, 32], strides = [1, 1, 1]} : vector<2x8x32xf32> to vector<2x1x32xf32>
    %128 = vector.extract_strided_slice %4 {offsets = [0, 5, 0], sizes = [2, 1, 32], strides = [1, 1, 1]} : vector<2x8x32xf32> to vector<2x1x32xf32>
    %c5 = arith.constant 5 : index
    %c0_38 = arith.constant 0 : index
    %c0_39 = arith.constant 0 : index
    %129 = vector.load %arg6[%c5, %c0_38, %c0_39] : memref<8x8x32xf32, #tpu.memory_space<vmem>>, vector<1x8x32xf32>
    %130 = vector.shape_cast %129 : vector<1x8x32xf32> to vector<8x32xf32>
    %131 = vector.shape_cast %130 : vector<8x32xf32> to vector<1x8x32xf32>
    %c5_40 = arith.constant 5 : index
    %c0_41 = arith.constant 0 : index
    %c0_42 = arith.constant 0 : index
    %132 = vector.load %arg7[%c5_40, %c0_41, %c0_42] : memref<8x8x32xf32, #tpu.memory_space<vmem>>, vector<1x8x32xf32>
    %133 = vector.shape_cast %132 : vector<1x8x32xf32> to vector<8x32xf32>
    %134 = vector.shape_cast %133 : vector<8x32xf32> to vector<1x8x32xf32>
    %135 = vector.broadcast %127 : vector<2x1x32xf32> to vector<2x8x32xf32>
    %136 = vector.broadcast %131 : vector<1x8x32xf32> to vector<2x8x32xf32>
    %137 = arith.mulf %135, %136 : vector<2x8x32xf32>
    %138 = vector.broadcast %128 : vector<2x1x32xf32> to vector<2x8x32xf32>
    %139 = vector.broadcast %134 : vector<1x8x32xf32> to vector<2x8x32xf32>
    %140 = arith.mulf %138, %139 : vector<2x8x32xf32>
    %141 = arith.subf %137, %140 : vector<2x8x32xf32>
    %142 = arith.addf %118, %141 : vector<2x8x32xf32>
    %143 = vector.broadcast %127 : vector<2x1x32xf32> to vector<2x8x32xf32>
    %144 = vector.broadcast %134 : vector<1x8x32xf32> to vector<2x8x32xf32>
    %145 = arith.mulf %143, %144 : vector<2x8x32xf32>
    %146 = vector.broadcast %128 : vector<2x1x32xf32> to vector<2x8x32xf32>
    %147 = vector.broadcast %131 : vector<1x8x32xf32> to vector<2x8x32xf32>
    %148 = arith.mulf %146, %147 : vector<2x8x32xf32>
    %149 = arith.addf %145, %148 : vector<2x8x32xf32>
    %150 = arith.addf %126, %149 : vector<2x8x32xf32>
    %151 = vector.extract_strided_slice %3 {offsets = [0, 6, 0], sizes = [2, 1, 32], strides = [1, 1, 1]} : vector<2x8x32xf32> to vector<2x1x32xf32>
    %152 = vector.extract_strided_slice %4 {offsets = [0, 6, 0], sizes = [2, 1, 32], strides = [1, 1, 1]} : vector<2x8x32xf32> to vector<2x1x32xf32>
    %c6 = arith.constant 6 : index
    %c0_43 = arith.constant 0 : index
    %c0_44 = arith.constant 0 : index
    %153 = vector.load %arg6[%c6, %c0_43, %c0_44] : memref<8x8x32xf32, #tpu.memory_space<vmem>>, vector<1x8x32xf32>
    %154 = vector.shape_cast %153 : vector<1x8x32xf32> to vector<8x32xf32>
    %155 = vector.shape_cast %154 : vector<8x32xf32> to vector<1x8x32xf32>
    %c6_45 = arith.constant 6 : index
    %c0_46 = arith.constant 0 : index
    %c0_47 = arith.constant 0 : index
    %156 = vector.load %arg7[%c6_45, %c0_46, %c0_47] : memref<8x8x32xf32, #tpu.memory_space<vmem>>, vector<1x8x32xf32>
    %157 = vector.shape_cast %156 : vector<1x8x32xf32> to vector<8x32xf32>
    %158 = vector.shape_cast %157 : vector<8x32xf32> to vector<1x8x32xf32>
    %159 = vector.broadcast %151 : vector<2x1x32xf32> to vector<2x8x32xf32>
    %160 = vector.broadcast %155 : vector<1x8x32xf32> to vector<2x8x32xf32>
    %161 = arith.mulf %159, %160 : vector<2x8x32xf32>
    %162 = vector.broadcast %152 : vector<2x1x32xf32> to vector<2x8x32xf32>
    %163 = vector.broadcast %158 : vector<1x8x32xf32> to vector<2x8x32xf32>
    %164 = arith.mulf %162, %163 : vector<2x8x32xf32>
    %165 = arith.subf %161, %164 : vector<2x8x32xf32>
    %166 = arith.addf %142, %165 : vector<2x8x32xf32>
    %167 = vector.broadcast %151 : vector<2x1x32xf32> to vector<2x8x32xf32>
    %168 = vector.broadcast %158 : vector<1x8x32xf32> to vector<2x8x32xf32>
    %169 = arith.mulf %167, %168 : vector<2x8x32xf32>
    %170 = vector.broadcast %152 : vector<2x1x32xf32> to vector<2x8x32xf32>
    %171 = vector.broadcast %155 : vector<1x8x32xf32> to vector<2x8x32xf32>
    %172 = arith.mulf %170, %171 : vector<2x8x32xf32>
    %173 = arith.addf %169, %172 : vector<2x8x32xf32>
    %174 = arith.addf %150, %173 : vector<2x8x32xf32>
    %175 = vector.extract_strided_slice %3 {offsets = [0, 7, 0], sizes = [2, 1, 32], strides = [1, 1, 1]} : vector<2x8x32xf32> to vector<2x1x32xf32>
    %176 = vector.extract_strided_slice %4 {offsets = [0, 7, 0], sizes = [2, 1, 32], strides = [1, 1, 1]} : vector<2x8x32xf32> to vector<2x1x32xf32>
    %c7 = arith.constant 7 : index
    %c0_48 = arith.constant 0 : index
    %c0_49 = arith.constant 0 : index
    %177 = vector.load %arg6[%c7, %c0_48, %c0_49] : memref<8x8x32xf32, #tpu.memory_space<vmem>>, vector<1x8x32xf32>
    %178 = vector.shape_cast %177 : vector<1x8x32xf32> to vector<8x32xf32>
    %179 = vector.shape_cast %178 : vector<8x32xf32> to vector<1x8x32xf32>
    %c7_50 = arith.constant 7 : index
    %c0_51 = arith.constant 0 : index
    %c0_52 = arith.constant 0 : index
    %180 = vector.load %arg7[%c7_50, %c0_51, %c0_52] : memref<8x8x32xf32, #tpu.memory_space<vmem>>, vector<1x8x32xf32>
    %181 = vector.shape_cast %180 : vector<1x8x32xf32> to vector<8x32xf32>
    %182 = vector.shape_cast %181 : vector<8x32xf32> to vector<1x8x32xf32>
    %183 = vector.broadcast %175 : vector<2x1x32xf32> to vector<2x8x32xf32>
    %184 = vector.broadcast %179 : vector<1x8x32xf32> to vector<2x8x32xf32>
    %185 = arith.mulf %183, %184 : vector<2x8x32xf32>
    %186 = vector.broadcast %176 : vector<2x1x32xf32> to vector<2x8x32xf32>
    %187 = vector.broadcast %182 : vector<1x8x32xf32> to vector<2x8x32xf32>
    %188 = arith.mulf %186, %187 : vector<2x8x32xf32>
    %189 = arith.subf %185, %188 : vector<2x8x32xf32>
    %190 = arith.addf %166, %189 : vector<2x8x32xf32>
    %191 = vector.broadcast %175 : vector<2x1x32xf32> to vector<2x8x32xf32>
    %192 = vector.broadcast %182 : vector<1x8x32xf32> to vector<2x8x32xf32>
    %193 = arith.mulf %191, %192 : vector<2x8x32xf32>
    %194 = vector.broadcast %176 : vector<2x1x32xf32> to vector<2x8x32xf32>
    %195 = vector.broadcast %179 : vector<1x8x32xf32> to vector<2x8x32xf32>
    %196 = arith.mulf %194, %195 : vector<2x8x32xf32>
    %197 = arith.addf %193, %196 : vector<2x8x32xf32>
    %198 = arith.addf %174, %197 : vector<2x8x32xf32>
    %c0_53 = arith.constant 0 : index
    %c0_54 = arith.constant 0 : index
    %c0_55 = arith.constant 0 : index
    %199 = vector.load %arg8[%c0_53, %c0_54, %c0_55] : memref<2x8x32xf32, #tpu.memory_space<vmem>>, vector<2x8x32xf32>
    tpu.vector_store %arg8[%c0_53, %c0_54, %c0_55], %190 {strides = array<i32>} : memref<2x8x32xf32, #tpu.memory_space<vmem>>, vector<2x8x32xf32>,
    %c0_56 = arith.constant 0 : index
    %c0_57 = arith.constant 0 : index
    %c0_58 = arith.constant 0 : index
    %200 = vector.load %arg9[%c0_56, %c0_57, %c0_58] : memref<2x8x32xf32, #tpu.memory_space<vmem>>, vector<2x8x32xf32>
    tpu.vector_store %arg9[%c0_56, %c0_57, %c0_58], %198 {strides = array<i32>} : memref<2x8x32xf32, #tpu.memory_space<vmem>>, vector<2x8x32xf32>,
    return
  }
  func.func @transform_0(%arg0: i32, %arg1: i32, %arg2: i32, %arg3: i32) -> (i32, i32, i32) {
    %c0_i32 = arith.constant 0 : i32
    return %arg0, %arg3, %arg2 : i32, i32, i32
  }
  func.func @transform_1(%arg0: i32, %arg1: i32, %arg2: i32, %arg3: i32) -> (i32, i32, i32) {
    %c0_i32 = arith.constant 0 : i32
    return %arg0, %arg3, %arg2 : i32, i32, i32
  }
  func.func @transform_2(%arg0: i32, %arg1: i32, %arg2: i32, %arg3: i32) -> (i32, i32, i32) {
    %c0_i32 = arith.constant 0 : i32
    return %arg3, %arg1, %arg2 : i32, i32, i32
  }
  func.func @transform_3(%arg0: i32, %arg1: i32, %arg2: i32, %arg3: i32) -> (i32, i32, i32) {
    %c0_i32 = arith.constant 0 : i32
    return %arg3, %arg1, %arg2 : i32, i32, i32
  }
  func.func @transform_4(%arg0: i32, %arg1: i32, %arg2: i32, %arg3: i32) -> (i32, i32, i32) {
    %c0_i32 = arith.constant 0 : i32
    return %arg0, %arg1, %arg2 : i32, i32, i32
  }
  func.func @transform_5(%arg0: i32, %arg1: i32, %arg2: i32, %arg3: i32) -> (i32, i32, i32) {
    %c0_i32 = arith.constant 0 : i32
    return %arg0, %arg1, %arg2 : i32, i32, i32
  }
}

module attributes {stable_mosaic.version = 11 : i64} {
  func.func @kernel(%arg0: i32, %arg1: i32, %arg2: memref<1x8x512xf32, #tpu.memory_space<vmem>>, %arg3: memref<8x8xf32, #tpu.memory_space<vmem>>, %arg4: memref<8x1xf32, #tpu.memory_space<vmem>>, %arg5: memref<1x8x512xf32, #tpu.memory_space<vmem>>, %arg6: memref<1x8x512xf32, #tpu.memory_space<vmem>>) attributes {dimension_semantics = [#tpu.dimension_semantics<parallel>, #tpu.dimension_semantics<parallel>], iteration_bounds = array<i64: 2, 1>, scalar_prefetch = 0 : i64, scratch_operands = 0 : i64, tpu.core_type = #tpu.core_type<tc>, window_params = [{transform_indices = @transform_0, window_bounds = array<i64: 1, 8, 512>}, {pipeline_mode = #tpu.pipeline_mode<synchronous>, transform_indices = @transform_1, window_bounds = array<i64: 8, 8>}, {pipeline_mode = #tpu.pipeline_mode<synchronous>, transform_indices = @transform_2, window_bounds = array<i64: 8, 1>}, {transform_indices = @transform_3, window_bounds = array<i64: 1, 8, 512>}, {transform_indices = @transform_4, window_bounds = array<i64: 1, 8, 512>}]} {
    %c0 = arith.constant 0 : index
    %c0_0 = arith.constant 0 : index
    %0 = vector.load %arg3[%c0, %c0_0] : memref<8x8xf32, #tpu.memory_space<vmem>>, vector<8x8xf32>
    %c0_1 = arith.constant 0 : index
    %c0_2 = arith.constant 0 : index
    %c0_3 = arith.constant 0 : index
    %1 = vector.load %arg2[%c0_1, %c0_2, %c0_3] : memref<1x8x512xf32, #tpu.memory_space<vmem>>, vector<1x8x512xf32>
    %2 = vector.shape_cast %1 : vector<1x8x512xf32> to vector<8x512xf32>
    %cst = arith.constant dense<0.000000e+00> : vector<8x512xf32>
    %3 = tpu.matmul %0, %2, %cst {dimension_numbers = #tpu.dot_dimension_numbers<[1], [0], [0], [1], [0, 0, 1, 1], [], []>} : vector<8x8xf32>, vector<8x512xf32>, vector<8x512xf32> -> vector<8x512xf32>
    %c0_4 = arith.constant 0 : index
    %c0_5 = arith.constant 0 : index
    %4 = vector.load %arg4[%c0_4, %c0_5] : memref<8x1xf32, #tpu.memory_space<vmem>>, vector<8x1xf32>
    %5 = vector.broadcast %4 : vector<8x1xf32> to vector<8x512xf32>
    %6 = arith.addf %3, %5 : vector<8x512xf32>
    %c0_6 = arith.constant 0 : index
    %c0_7 = arith.constant 0 : index
    %c0_8 = arith.constant 0 : index
    %7 = vector.load %arg5[%c0_6, %c0_7, %c0_8] : memref<1x8x512xf32, #tpu.memory_space<vmem>>, vector<1x8x512xf32>
    %8 = vector.shape_cast %7 : vector<1x8x512xf32> to vector<8x512xf32>
    %9 = arith.addf %6, %8 : vector<8x512xf32>
    %cst_9 = arith.constant 5.000000e-01 : f32
    %10 = vector.broadcast %cst_9 : f32 to vector<8x512xf32>
    %11 = arith.mulf %10, %9 : vector<8x512xf32>
    %cst_10 = arith.constant 4.471500e-02 : f32
    %12 = vector.broadcast %cst_10 : f32 to vector<8x512xf32>
    %13 = arith.mulf %12, %9 : vector<8x512xf32>
    %14 = arith.mulf %13, %9 : vector<8x512xf32>
    %15 = arith.mulf %14, %9 : vector<8x512xf32>
    %16 = arith.addf %9, %15 : vector<8x512xf32>
    %cst_11 = arith.constant 0.797884583 : f32
    %17 = vector.broadcast %cst_11 : f32 to vector<8x512xf32>
    %18 = arith.mulf %17, %16 : vector<8x512xf32>
    %19 = math.tanh %18 : vector<8x512xf32>
    %cst_12 = arith.constant 1.000000e+00 : f32
    %20 = vector.broadcast %cst_12 : f32 to vector<8x512xf32>
    %21 = arith.addf %20, %19 : vector<8x512xf32>
    %22 = arith.mulf %11, %21 : vector<8x512xf32>
    %c0_13 = arith.constant 0 : index
    %c0_14 = arith.constant 0 : index
    %c0_15 = arith.constant 0 : index
    %23 = vector.load %arg6[%c0_13, %c0_14, %c0_15] : memref<1x8x512xf32, #tpu.memory_space<vmem>>, vector<1x8x512xf32>
    %24 = vector.shape_cast %23 : vector<1x8x512xf32> to vector<8x512xf32>
    %25 = vector.shape_cast %22 : vector<8x512xf32> to vector<1x8x512xf32>
    tpu.vector_store %arg6[%c0_13, %c0_14, %c0_15], %25 {strides = array<i32>} : memref<1x8x512xf32, #tpu.memory_space<vmem>>, vector<1x8x512xf32>,
    return
  }
  func.func @transform_0(%arg0: i32, %arg1: i32) -> (i32, i32, i32) {
    %c0_i32 = arith.constant 0 : i32
    %c0_i32_0 = arith.constant 0 : i32
    return %arg0, %c0_i32, %arg1 : i32, i32, i32
  }
  func.func @transform_1(%arg0: i32, %arg1: i32) -> (i32, i32) {
    %c0_i32 = arith.constant 0 : i32
    %c0_i32_0 = arith.constant 0 : i32
    %c0_i32_1 = arith.constant 0 : i32
    return %c0_i32, %c0_i32_0 : i32, i32
  }
  func.func @transform_2(%arg0: i32, %arg1: i32) -> (i32, i32) {
    %c0_i32 = arith.constant 0 : i32
    %c0_i32_0 = arith.constant 0 : i32
    %c0_i32_1 = arith.constant 0 : i32
    return %c0_i32, %c0_i32_0 : i32, i32
  }
  func.func @transform_3(%arg0: i32, %arg1: i32) -> (i32, i32, i32) {
    %c0_i32 = arith.constant 0 : i32
    %c0_i32_0 = arith.constant 0 : i32
    return %arg0, %c0_i32, %arg1 : i32, i32, i32
  }
  func.func @transform_4(%arg0: i32, %arg1: i32) -> (i32, i32, i32) {
    %c0_i32 = arith.constant 0 : i32
    %c0_i32_0 = arith.constant 0 : i32
    return %arg0, %c0_i32, %arg1 : i32, i32, i32
  }
}

module attributes {stable_mosaic.version = 11 : i64} {
  func.func @kernel(%arg0: i32, %arg1: i32, %arg2: memref<1x8x512xf32, #tpu.memory_space<vmem>>, %arg3: memref<8x8xf32, #tpu.memory_space<vmem>>, %arg4: memref<8x1xf32, #tpu.memory_space<vmem>>, %arg5: memref<1x8x512xf32, #tpu.memory_space<vmem>>, %arg6: memref<1x8x512xf32, #tpu.memory_space<vmem>>) attributes {dimension_semantics = [#tpu.dimension_semantics<parallel>, #tpu.dimension_semantics<parallel>], iteration_bounds = array<i64: 2, 1>, scalar_prefetch = 0 : i64, scratch_operands = 0 : i64, tpu.core_type = #tpu.core_type<tc>, window_params = [{transform_indices = @transform_0, window_bounds = array<i64: 1, 8, 512>}, {pipeline_mode = #tpu.pipeline_mode<synchronous>, transform_indices = @transform_1, window_bounds = array<i64: 8, 8>}, {pipeline_mode = #tpu.pipeline_mode<synchronous>, transform_indices = @transform_2, window_bounds = array<i64: 8, 1>}, {transform_indices = @transform_3, window_bounds = array<i64: 1, 8, 512>}, {transform_indices = @transform_4, window_bounds = array<i64: 1, 8, 512>}]} {
    %c0 = arith.constant 0 : index
    %c0_0 = arith.constant 0 : index
    %0 = vector.load %arg3[%c0, %c0_0] : memref<8x8xf32, #tpu.memory_space<vmem>>, vector<8x8xf32>
    %c0_1 = arith.constant 0 : index
    %c0_2 = arith.constant 0 : index
    %c0_3 = arith.constant 0 : index
    %1 = vector.load %arg2[%c0_1, %c0_2, %c0_3] : memref<1x8x512xf32, #tpu.memory_space<vmem>>, vector<1x8x512xf32>
    %2 = vector.shape_cast %1 : vector<1x8x512xf32> to vector<8x512xf32>
    %cst = arith.constant dense<0.000000e+00> : vector<8x512xf32>
    %3 = tpu.matmul %0, %2, %cst {dimension_numbers = #tpu.dot_dimension_numbers<[1], [0], [0], [1], [0, 0, 1, 1], [], []>} : vector<8x8xf32>, vector<8x512xf32>, vector<8x512xf32> -> vector<8x512xf32>
    %c0_4 = arith.constant 0 : index
    %c0_5 = arith.constant 0 : index
    %4 = vector.load %arg4[%c0_4, %c0_5] : memref<8x1xf32, #tpu.memory_space<vmem>>, vector<8x1xf32>
    %5 = vector.broadcast %4 : vector<8x1xf32> to vector<8x512xf32>
    %6 = arith.addf %3, %5 : vector<8x512xf32>
    %c0_6 = arith.constant 0 : index
    %c0_7 = arith.constant 0 : index
    %c0_8 = arith.constant 0 : index
    %7 = vector.load %arg5[%c0_6, %c0_7, %c0_8] : memref<1x8x512xf32, #tpu.memory_space<vmem>>, vector<1x8x512xf32>
    %8 = vector.shape_cast %7 : vector<1x8x512xf32> to vector<8x512xf32>
    %9 = arith.addf %6, %8 : vector<8x512xf32>
    %c0_9 = arith.constant 0 : index
    %c0_10 = arith.constant 0 : index
    %c0_11 = arith.constant 0 : index
    %10 = vector.load %arg6[%c0_9, %c0_10, %c0_11] : memref<1x8x512xf32, #tpu.memory_space<vmem>>, vector<1x8x512xf32>
    %11 = vector.shape_cast %10 : vector<1x8x512xf32> to vector<8x512xf32>
    %12 = vector.shape_cast %9 : vector<8x512xf32> to vector<1x8x512xf32>
    tpu.vector_store %arg6[%c0_9, %c0_10, %c0_11], %12 {strides = array<i32>} : memref<1x8x512xf32, #tpu.memory_space<vmem>>, vector<1x8x512xf32>,
    return
  }
  func.func @transform_0(%arg0: i32, %arg1: i32) -> (i32, i32, i32) {
    %c0_i32 = arith.constant 0 : i32
    %c0_i32_0 = arith.constant 0 : i32
    return %arg0, %c0_i32, %arg1 : i32, i32, i32
  }
  func.func @transform_1(%arg0: i32, %arg1: i32) -> (i32, i32) {
    %c0_i32 = arith.constant 0 : i32
    %c0_i32_0 = arith.constant 0 : i32
    %c0_i32_1 = arith.constant 0 : i32
    return %c0_i32, %c0_i32_0 : i32, i32
  }
  func.func @transform_2(%arg0: i32, %arg1: i32) -> (i32, i32) {
    %c0_i32 = arith.constant 0 : i32
    %c0_i32_0 = arith.constant 0 : i32
    %c0_i32_1 = arith.constant 0 : i32
    return %c0_i32, %c0_i32_0 : i32, i32
  }
  func.func @transform_3(%arg0: i32, %arg1: i32) -> (i32, i32, i32) {
    %c0_i32 = arith.constant 0 : i32
    %c0_i32_0 = arith.constant 0 : i32
    return %arg0, %c0_i32, %arg1 : i32, i32, i32
  }
  func.func @transform_4(%arg0: i32, %arg1: i32) -> (i32, i32, i32) {
    %c0_i32 = arith.constant 0 : i32
    %c0_i32_0 = arith.constant 0 : i32
    return %arg0, %c0_i32, %arg1 : i32, i32, i32
  }
}

module attributes {stable_mosaic.version = 11 : i64} {
  func.func @_mlp_head_kernel(%arg0: i32, %arg1: i32, %arg2: memref<1x8x512xf32, #tpu.memory_space<vmem>>, %arg3: memref<16x8xf32, #tpu.memory_space<vmem>>, %arg4: memref<16x1xf32, #tpu.memory_space<vmem>>, %arg5: memref<1x16xf32, #tpu.memory_space<vmem>>, %arg6: memref<1x1xf32, #tpu.memory_space<vmem>>, %arg7: memref<1x1x512xf32, #tpu.memory_space<vmem>>) attributes {dimension_semantics = [#tpu.dimension_semantics<parallel>, #tpu.dimension_semantics<parallel>], iteration_bounds = array<i64: 2, 1>, scalar_prefetch = 0 : i64, scratch_operands = 0 : i64, tpu.core_type = #tpu.core_type<tc>, window_params = [{transform_indices = @transform_0, window_bounds = array<i64: 1, 8, 512>}, {pipeline_mode = #tpu.pipeline_mode<synchronous>, transform_indices = @transform_1, window_bounds = array<i64: 16, 8>}, {pipeline_mode = #tpu.pipeline_mode<synchronous>, transform_indices = @transform_2, window_bounds = array<i64: 16, 1>}, {pipeline_mode = #tpu.pipeline_mode<synchronous>, transform_indices = @transform_3, window_bounds = array<i64: 1, 16>}, {pipeline_mode = #tpu.pipeline_mode<synchronous>, transform_indices = @transform_4, window_bounds = array<i64: 1, 1>}, {transform_indices = @transform_5, window_bounds = array<i64: 1, 1, 512>}]} {
    %c0 = arith.constant 0 : index
    %c0_0 = arith.constant 0 : index
    %0 = vector.load %arg3[%c0, %c0_0] : memref<16x8xf32, #tpu.memory_space<vmem>>, vector<16x8xf32>
    %c0_1 = arith.constant 0 : index
    %c0_2 = arith.constant 0 : index
    %c0_3 = arith.constant 0 : index
    %1 = vector.load %arg2[%c0_1, %c0_2, %c0_3] : memref<1x8x512xf32, #tpu.memory_space<vmem>>, vector<1x8x512xf32>
    %2 = vector.shape_cast %1 : vector<1x8x512xf32> to vector<8x512xf32>
    %cst = arith.constant dense<0.000000e+00> : vector<16x512xf32>
    %3 = tpu.matmul %0, %2, %cst {dimension_numbers = #tpu.dot_dimension_numbers<[1], [0], [0], [1], [0, 0, 1, 1], [], []>} : vector<16x8xf32>, vector<8x512xf32>, vector<16x512xf32> -> vector<16x512xf32>
    %c0_4 = arith.constant 0 : index
    %c0_5 = arith.constant 0 : index
    %4 = vector.load %arg4[%c0_4, %c0_5] : memref<16x1xf32, #tpu.memory_space<vmem>>, vector<16x1xf32>
    %5 = vector.broadcast %4 : vector<16x1xf32> to vector<16x512xf32>
    %6 = arith.addf %3, %5 : vector<16x512xf32>
    %cst_6 = arith.constant 5.000000e-01 : f32
    %7 = vector.broadcast %cst_6 : f32 to vector<16x512xf32>
    %8 = arith.mulf %7, %6 : vector<16x512xf32>
    %cst_7 = arith.constant 4.471500e-02 : f32
    %9 = vector.broadcast %cst_7 : f32 to vector<16x512xf32>
    %10 = arith.mulf %9, %6 : vector<16x512xf32>
    %11 = arith.mulf %10, %6 : vector<16x512xf32>
    %12 = arith.mulf %11, %6 : vector<16x512xf32>
    %13 = arith.addf %6, %12 : vector<16x512xf32>
    %cst_8 = arith.constant 0.797884583 : f32
    %14 = vector.broadcast %cst_8 : f32 to vector<16x512xf32>
    %15 = arith.mulf %14, %13 : vector<16x512xf32>
    %16 = math.tanh %15 : vector<16x512xf32>
    %cst_9 = arith.constant 1.000000e+00 : f32
    %17 = vector.broadcast %cst_9 : f32 to vector<16x512xf32>
    %18 = arith.addf %17, %16 : vector<16x512xf32>
    %19 = arith.mulf %8, %18 : vector<16x512xf32>
    %c0_10 = arith.constant 0 : index
    %c0_11 = arith.constant 0 : index
    %20 = vector.load %arg5[%c0_10, %c0_11] : memref<1x16xf32, #tpu.memory_space<vmem>>, vector<1x16xf32>
    %cst_12 = arith.constant dense<0.000000e+00> : vector<1x512xf32>
    %21 = tpu.matmul %20, %19, %cst_12 {dimension_numbers = #tpu.dot_dimension_numbers<[1], [0], [0], [1], [0, 0, 1, 1], [], []>} : vector<1x16xf32>, vector<16x512xf32>, vector<1x512xf32> -> vector<1x512xf32>
    %c0_13 = arith.constant 0 : index
    %c0_14 = arith.constant 0 : index
    %22 = vector.load %arg6[%c0_13, %c0_14] : memref<1x1xf32, #tpu.memory_space<vmem>>, vector<1x1xf32>
    %23 = vector.broadcast %22 : vector<1x1xf32> to vector<1x512xf32>
    %24 = arith.addf %21, %23 : vector<1x512xf32>
    %c0_15 = arith.constant 0 : index
    %c0_16 = arith.constant 0 : index
    %c0_17 = arith.constant 0 : index
    %25 = vector.load %arg7[%c0_15, %c0_16, %c0_17] : memref<1x1x512xf32, #tpu.memory_space<vmem>>, vector<1x1x512xf32>
    %26 = vector.shape_cast %25 : vector<1x1x512xf32> to vector<1x512xf32>
    %27 = vector.shape_cast %24 : vector<1x512xf32> to vector<1x1x512xf32>
    tpu.vector_store %arg7[%c0_15, %c0_16, %c0_17], %27 {strides = array<i32>} : memref<1x1x512xf32, #tpu.memory_space<vmem>>, vector<1x1x512xf32>,
    return
  }
  func.func @transform_0(%arg0: i32, %arg1: i32) -> (i32, i32, i32) {
    %c0_i32 = arith.constant 0 : i32
    %c0_i32_0 = arith.constant 0 : i32
    return %arg0, %c0_i32, %arg1 : i32, i32, i32
  }
  func.func @transform_1(%arg0: i32, %arg1: i32) -> (i32, i32) {
    %c0_i32 = arith.constant 0 : i32
    %c0_i32_0 = arith.constant 0 : i32
    %c0_i32_1 = arith.constant 0 : i32
    return %c0_i32, %c0_i32_0 : i32, i32
  }
  func.func @transform_2(%arg0: i32, %arg1: i32) -> (i32, i32) {
    %c0_i32 = arith.constant 0 : i32
    %c0_i32_0 = arith.constant 0 : i32
    %c0_i32_1 = arith.constant 0 : i32
    return %c0_i32, %c0_i32_0 : i32, i32
  }
  func.func @transform_3(%arg0: i32, %arg1: i32) -> (i32, i32) {
    %c0_i32 = arith.constant 0 : i32
    %c0_i32_0 = arith.constant 0 : i32
    %c0_i32_1 = arith.constant 0 : i32
    return %c0_i32, %c0_i32_0 : i32, i32
  }
  func.func @transform_4(%arg0: i32, %arg1: i32) -> (i32, i32) {
    %c0_i32 = arith.constant 0 : i32
    %c0_i32_0 = arith.constant 0 : i32
    %c0_i32_1 = arith.constant 0 : i32
    return %c0_i32, %c0_i32_0 : i32, i32
  }
  func.func @transform_5(%arg0: i32, %arg1: i32) -> (i32, i32, i32) {
    %c0_i32 = arith.constant 0 : i32
    %c0_i32_0 = arith.constant 0 : i32
    return %arg0, %c0_i32, %arg1 : i32, i32, i32
  }
}

</mosaic_0001>

<bundles_post_ra>
// kernel: _lambda_.8
= control target key start
LH: loop header
LB: loop body
LE: loop exit
PB: predicated region body
PF: predicated region fallthrough
CT: control target
= control target key end

     0   :  { %s563_s12 = smov 0   ;;  %s565_s13 = smov 0   ;;  %s602_s0 = inlined_call_operand.vmem [shape: f32[2,4,512], index: 0, kind: input, shape index: {}]   ;;  %s603_s1 = inlined_call_operand.vmem [shape: f32[8,4], index: 1, kind: input, shape index: {}]   ;;  %s604_s2 = inlined_call_operand.vmem [shape: f32[8,1], index: 2, kind: input, shape index: {}]   ;;  %s605_s3 = inlined_call_operand.vmem [shape: f32[2,8,512], index: 3, kind: output, shape index: {}]  }
   0x1   :  { %s567_s14 = smov 0  }
   0x2 LB: > { %s25_s15 = sadd.s32 1, %s535_s13  ;;  %p473_p0 = scmp.ge.s32.totalorder %s539_s14, 1  ;;  %s539_s14 = sphi %s567_s14, %s13_s14   ;;  %s535_s13 = sphi %s565_s13, %s607_s13   ;;  %s531_s12 = sphi %s563_s12, %s606_s12  }
   0x3   : > { %p27_p1 = scmp.ge.s32.totalorder %s25_s15, 2  ;;  %p158_p2 = scmp.lt.s32.totalorder %s539_s14, 3 }
   0x5   : > { %s609_s15 = smov (%p27_p1, %s25_s15), 0  ;;  %p159_p3 = pnand %p473_p0, %p158_p2 }
   0x6   : > { %p191_p4 = scmp.lt.s32.totalorder (!%p159_p3), %s531_s12, 1  ;;  %v541_v0 = vmov (!%p159_p3), 0.0   ;;  %v213_v1 = vld [vmem:[%s604_s2] sm:$0xff] (!%p159_p3)  ;;  %v542_v2 = vmov (!%p159_p3), 0   ;;  %vm227_vm0 = vcmask (!%p159_p3), 1043456   ;;  %vm223_vm1 = vcmask (!%p159_p3), 31744  }
   0x7   : > { %162 = sbr.rel (%p159_p3) target bundleno = 238 (0xee), region = 32  ;;  %300 = vmatprep.mubr.f32.mxu0 (!%p159_p3), %v541_v0  ;;  %371 = vmatprep.mubr.f32.mxu1 (!%p159_p3), %v541_v0  ;;  %v210_v7 = vld [vmem:[%s603_s1] sm:$0xff] (!%p159_p3) }
   0x8   : > { %514 = vset.pattern.permute.xlu0 (!%p159_p3), %v542_v2 }
   0x9   : > { %216 = vperm.xlu0 (!%p159_p3), %514, %v213_v1  }
   0xe   : > { %s611_s12 = smov (!%p191_p4, %s531_s12), 1 }
   0xf   : > { %s486_s18 = sshll.u32 %s611_s12, 4  ;;  %s487_s24 = sshll.u32 %s611_s12, 5 }
  0x10   : > { %s198_s21 = scalar_lea.vmem %s602_s0, %s486_s18  ;;  %s208_s27 = scalar_lea.vmem %s605_s3, %s487_s24 }
  0x11   : > { %v211_v3 = vld [vmem:[%s198_s21] sm:$0xff]  ;;  %v212_v4 = vld [vmem:[%s198_s21 + $0x8] sm:$0xff] }
  0x12   : > { %v221_v5 = vcombine.high %v211_v3, %v211_v3  ;;  %v222_v6 = vcombine.high %v212_v4, %v212_v4 }
  0x14   : > { %478 = vmatprep.subr.msk.mxu0 %vm227_vm0, %v221_v5  ;;  %481 = vmatprep.subr.msk.mxu1 %vm227_vm0, %v222_v6 }
  0x15   : > { %479 = vmatpush1.msk.msra.mxu0 %vm227_vm0, %v211_v3  ;;  %482 = vmatpush1.msk.msra.mxu1 %vm227_vm0, %v212_v4 }
  0x16   : > { %480 = vmatmul.mubr.msk.f32.vlgmr.msra.gmra.mrb[0].mxu0 %vm223_vm1, %v210_v7  ;;  %483 = vmatmul.mubr.msk.f32.vlgmr.msra.gmra.mrb[0].mxu1 %vm223_vm1, %v210_v7 }
  0x88   : > { %v217_v8 = vpop.permute.xlu0 %216 }
  0xe9   : > { %v302_v9 = vpop.f32.mrb[0].mxu0  ;;  %v373_v10 = vpop.f32.mrb[0].mxu1 }
  0xea   : > { %v303_v11 = vadd.f32 %v302_v9, %v217_v8  ;;  %v374_v12 = vadd.f32 %v373_v10, %v217_v8  ;;  %v304_v13 = vpop.f32.mrb[1].mxu0  ;;  %v375_v14 = vpop.f32.mrb[1].mxu1 }
  0xeb   : > { %v305_v15 = vadd.f32 %v304_v13, %v217_v8  ;;  %v376_v16 = vadd.f32 %v375_v14, %v217_v8 }
  0xec   : > { %378 = vst [vmem:[%s208_s27] sm:$0xff] %v303_v11  ;;  %380 = vst [vmem:[%s208_s27 + $0x10] sm:$0xff] %v374_v12 }
  0xed   : > { %379 = vst [vmem:[%s208_s27 + $0x8] sm:$0xff] %v305_v15  ;;  %381 = vst [vmem:[%s208_s27 + $0x18] sm:$0xff] %v376_v16 }
  0xee PF: > { %s13_s14 = sadd.s32 1, %s539_s14   ;;  %s606_s12 = smov %s535_s13 }
  0xef   : > { %p10_p5 = scmp.ge.s32.totalorder %s13_s14, 4   ;;  %s607_s13 = smov %s609_s15 }
  0xf1   :  { %12 = sbr.rel (!%p10_p5) target bundleno = 2 (0x2), region = 62 }

// kernel: _lambda_.9
= control target key start
LH: loop header
LB: loop body
LE: loop exit
PB: predicated region body
PF: predicated region fallthrough
CT: control target
= control target key end

     0   :  { %vm23_vm0 = vcmask 261120   ;;  %v38_v0 = vlaneseq  ;;  %v350_v1 = vmov 0.0   ;;  %s781_s4 = inlined_call_operand.vmem [shape: f32[2,8,32], index: 4, kind: output, shape index: {0}]   ;;  %s782_s5 = inlined_call_operand.vmem [shape: f32[2,8,32], index: 5, kind: output, shape index: {1}]   ;;  %s783_s0 = inlined_call_operand.vmem [shape: f32[2,8,32], index: 0, kind: input, shape index: {}]   ;;  %s784_s1 = inlined_call_operand.vmem [shape: f32[2,8,32], index: 1, kind: input, shape index: {}]   ;;  %s785_s2 = inlined_call_operand.vmem [shape: f32[8,8,32], index: 2, kind: input, shape index: {}]   ;;  %s786_s3 = inlined_call_operand.vmem [shape: f32[8,8,32], index: 3, kind: input, shape index: {}]  }
   0x1   :  { %24 = vst.msk [vmem:[%s781_s4] sm:$0xff] %vm23_vm0, %v350_v1  ;;  %25 = vst.msk [vmem:[%s781_s4 + $0x8] sm:$0xff] %vm23_vm0, %v350_v1  ;;  %v400_v3 = vld [vmem:[%s783_s0] sm:$0xff]  ;;  %v428_v11 = vld [vmem:[%s785_s2 + $0x8] sm:$0xff] }
   0x2   :  { %26 = vst.msk [vmem:[%s782_s5] sm:$0xff] %vm23_vm0, %v350_v1  ;;  %27 = vst.msk [vmem:[%s782_s5 + $0x8] sm:$0xff] %vm23_vm0, %v350_v1  ;;  %v39_v2 = vshrl.u32 %v38_v0, 7  ;;  %v405_v4 = vld [vmem:[%s784_s1] sm:$0xff]  ;;  %v433_v12 = vld [vmem:[%s786_s3 + $0x8] sm:$0xff] }
   0x3   :  { %v410_v5 = vld [vmem:[%s785_s2] sm:$0xff]  ;;  %v438_v13 = vld [vmem:[%s785_s2 + $0x10] sm:$0xff]  ;;  %v470_v22 = vld [vmem:[%s785_s2 + $0x18] sm:$0xff] }
   0x4   :  { %v415_v6 = vld [vmem:[%s786_s3] sm:$0xff]  ;;  %v417_v7 = vsub.s32 0, %v39_v2  ;;  %v419_v8 = vsub.s32 1, %v39_v2  ;;  %v421_v9 = vsub.s32 2, %v39_v2  ;;  %v423_v10 = vsub.s32 3, %v39_v2  ;;  %v465_v21 = vld [vmem:[%s786_s3 + $0x10] sm:$0xff] }
   0x5   :  { %v440_v14 = vsub.s32 4, %v39_v2  ;;  %v442_v15 = vsub.s32 5, %v39_v2  ;;  %v444_v16 = vsub.s32 6, %v39_v2  ;;  %v475_v23 = vld [vmem:[%s786_s3 + $0x18] sm:$0xff]  ;;  %v515_v37 = vld [vmem:[%s785_s2 + $0x20] sm:$0xff]  ;;  %v533_v43 = vld [vmem:[%s785_s2 + $0x28] sm:$0xff] }
   0x6   :  { %v448_v17 = vrot.slane %v400_v3, %v417_v7  ;;  %v452_v18 = vrot.slane %v405_v4, %v417_v7  ;;  %v456_v19 = vrot.slane %v400_v3, %v419_v8  ;;  %v460_v20 = vrot.slane %v405_v4, %v419_v8  ;;  %v520_v38 = vld [vmem:[%s786_s3 + $0x20] sm:$0xff]  ;;  %v538_v44 = vld [vmem:[%s786_s3 + $0x28] sm:$0xff]  ;;  %v551_v49 = vld [vmem:[%s785_s2 + $0x30] sm:$0xff] }
   0x7   :  { %v479_v24 = vrot.slane %v400_v3, %v421_v9  ;;  %v483_v25 = vrot.slane %v405_v4, %v421_v9  ;;  %v487_v26 = vrot.slane %v400_v3, %v423_v10  ;;  %v491_v27 = vrot.slane %v405_v4, %v423_v10  ;;  %v556_v50 = vld [vmem:[%s783_s0 + $0x8] sm:$0xff]  ;;  %v565_v54 = vld [vmem:[%s786_s3 + $0x30] sm:$0xff]  ;;  %v587_v0 = vld [vmem:[%s785_s2 + $0x38] sm:$0xff] }
   0x8   :  { %v46_v28 = vmul.f32 %v448_v17, %v410_v5  ;;  %v56_v29 = vmul.f32 %v452_v18, %v415_v6  ;;  %v82_v30 = vmul.f32 %v428_v11, %v456_v19  ;;  %v92_v31 = vmul.f32 %v433_v12, %v460_v20  ;;  %v32_v32 = vld [vmem:[%s781_s4] sm:$0xff]  ;;  %v31_v60 = vld [vmem:[%s784_s1 + $0x8] sm:$0xff]  ;;  %v592_v1 = vld [vmem:[%s786_s3 + $0x38] sm:$0xff] }
   0x9   :  { %v118_v33 = vmul.f32 %v438_v13, %v479_v24  ;;  %v128_v34 = vmul.f32 %v465_v21, %v483_v25  ;;  %v154_v35 = vmul.f32 %v470_v22, %v487_v26  ;;  %v164_v36 = vmul.f32 %v475_v23, %v491_v27 }
   0xa   :  { %v58_v39 = vsub.f32 %v46_v28, %v56_v29  ;;  %v94_v40 = vsub.f32 %v82_v30, %v92_v31  ;;  %v524_v41 = vrot.slane %v400_v3, %v440_v14  ;;  %v528_v42 = vrot.slane %v405_v4, %v440_v14 }
   0xb   :  { %v130_v45 = vsub.f32 %v118_v33, %v128_v34  ;;  %v166_v46 = vsub.f32 %v154_v35, %v164_v36  ;;  %v542_v47 = vrot.slane %v400_v3, %v442_v15  ;;  %v546_v48 = vrot.slane %v405_v4, %v442_v15 }
   0xc   :  { %v60_v51 = vadd.f32 %v58_v39, %v32_v32  ;;  %v190_v52 = vmul.f32 %v515_v37, %v524_v41  ;;  %v200_v53 = vmul.f32 %v520_v38, %v528_v42  ;;  %v569_v55 = vrot.slane %v400_v3, %v444_v16 }
   0xd   :  { %v226_v56 = vmul.f32 %v533_v43, %v542_v47  ;;  %v236_v57 = vmul.f32 %v538_v44, %v546_v48  ;;  %v577_v58 = vrot.slane %v405_v4, %v444_v16  ;;  %v292_v59 = vsub.s32 7, %v39_v2 }
   0xe   :  { %v96_v61 = vadd.f32 %v94_v40, %v60_v51  ;;  %v202_v62 = vsub.f32 %v190_v52, %v200_v53  ;;  %v262_v63 = vmul.f32 %v551_v49, %v569_v55  ;;  %v596_v2 = vrot.slane %v556_v50, %v417_v7  ;;  %v33_v53 = vld [vmem:[%s781_s4 + $0x8] sm:$0xff] }
   0xf   :  { %v238_v28 = vsub.f32 %v226_v56, %v236_v57  ;;  %v272_v29 = vmul.f32 %v565_v54, %v577_v58  ;;  %v601_v30 = vrot.slane %v400_v3, %v292_v59  ;;  %v604_v31 = vrot.slane %v405_v4, %v292_v59 }
  0x10   :  { %v132_v32 = vadd.f32 %v130_v45, %v96_v61  ;;  %v47_v33 = vmul.f32 %v596_v2, %v410_v5  ;;  %v609_v34 = vrot.slane %v31_v60, %v417_v7  ;;  %v613_v35 = vrot.slane %v556_v50, %v419_v8 }
  0x11   :  { %790 = vst [vmem:[#allocation2_spill] sm:$0xff] %v604_v31  ;;  %v274_v36 = vsub.f32 %v262_v63, %v272_v29  ;;  %v298_v39 = vmul.f32 %v587_v0, %v601_v30  ;;  %v308_v3 = vmul.f32 %v592_v1, %v604_v31  ;;  %v620_v4 = vrot.slane %v31_v60, %v419_v8 }
  0x12   :  { %v168_v40 = vadd.f32 %v166_v46, %v132_v32  ;;  %v57_v45 = vmul.f32 %v609_v34, %v415_v6  ;;  %v83_v7 = vmul.f32 %v428_v11, %v613_v35  ;;  %v628_v51 = vrot.slane %v556_v50, %v421_v9 }
  0x13   :  { %v310_v52 = vsub.f32 %v298_v39, %v308_v3  ;;  %v93_v8 = vmul.f32 %v433_v12, %v620_v4  ;;  %v636_v46 = vrot.slane %v31_v60, %v421_v9  ;;  %v640_v56 = vrot.slane %v556_v50, %v423_v10 }
  0x14   :  { %v204_v57 = vadd.f32 %v202_v62, %v168_v40  ;;  %v59_v61 = vsub.f32 %v47_v33, %v57_v45  ;;  %v119_v63 = vmul.f32 %v438_v13, %v628_v51  ;;  %v645_v29 = vrot.slane %v31_v60, %v423_v10 }
  0x15   :  { %791 = vst [vmem:[#allocation3_spill] sm:$0xff] %v640_v56  ;;  %v95_v32 = vsub.f32 %v83_v7, %v93_v8  ;;  %v129_v39 = vmul.f32 %v465_v21, %v636_v46  ;;  %v155_v9 = vmul.f32 %v470_v22, %v640_v56  ;;  %v653_v3 = vrot.slane %v556_v50, %v440_v14 }
  0x16   :  { %v240_v31 = vadd.f32 %v238_v28, %v204_v57  ;;  %v61_v62 = vadd.f32 %v59_v61, %v33_v53  ;;  %v165_v33 = vmul.f32 %v475_v23, %v645_v29  ;;  %v658_v40 = vrot.slane %v31_v60, %v440_v14 }
  0x17   :  { %v131_v10 = vsub.f32 %v119_v63, %v129_v39  ;;  %v191_v45 = vmul.f32 %v515_v37, %v653_v3  ;;  %v664_v7 = vrot.slane %v556_v50, %v442_v15  ;;  %v667_v8 = vrot.slane %v31_v60, %v442_v15 }
  0x18   :  { %v276_v56 = vadd.f32 %v274_v36, %v240_v31  ;;  %v97_v28 = vadd.f32 %v95_v32, %v61_v62  ;;  %v167_v53 = vsub.f32 %v155_v9, %v165_v33  ;;  %v201_v57 = vmul.f32 %v520_v38, %v658_v40 }
  0x19   :  { %792 = vst [vmem:[#allocation4_spill] sm:$0xff] %v667_v8  ;;  %v227_v14 = vmul.f32 %v533_v43, %v664_v7  ;;  %v237_v61 = vmul.f32 %v538_v44, %v667_v8  ;;  %v677_v63 = vrot.slane %v556_v50, %v444_v16  ;;  %v680_v39 = vrot.slane %v31_v60, %v444_v16 }
  0x1a   :  { %v312_v15 = vadd.f32 %v310_v52, %v276_v56  ;;  %v133_v31 = vadd.f32 %v131_v10, %v97_v28  ;;  %v203_v36 = vsub.f32 %v191_v45, %v201_v57  ;;  %v683_v32 = vrot.slane %v556_v50, %v292_v59 }
  0x1b   :  { %v239_v9 = vsub.f32 %v227_v14, %v237_v61  ;;  %v263_v62 = vmul.f32 %v551_v49, %v677_v63  ;;  %v273_v33 = vmul.f32 %v565_v54, %v680_v39  ;;  %v689_v8 = vrot.slane %v31_v60, %v292_v59  ;;  %v34_v60 = vld [vmem:[%s782_s5] sm:$0xff] }
  0x1c   :  { %323 = vst.msk [vmem:[%s781_s4] sm:$0xff] %vm23_vm0, %v312_v15  ;;  %v169_v16 = vadd.f32 %v167_v53, %v133_v31  ;;  %v299_v52 = vmul.f32 %v587_v0, %v683_v32  ;;  %v62_v50 = vmul.f32 %v448_v17, %v415_v6  ;;  %v64_v56 = vmul.f32 %v452_v18, %v410_v5 }
  0x1d   :  { %v275_v10 = vsub.f32 %v263_v62, %v273_v33  ;;  %v309_v59 = vmul.f32 %v592_v1, %v689_v8  ;;  %v98_v45 = vmul.f32 %v433_v12, %v456_v19  ;;  %v100_v28 = vmul.f32 %v428_v11, %v460_v20 }
  0x1e   :  { %v205_v53 = vadd.f32 %v203_v36, %v169_v16  ;;  %v66_v57 = vadd.f32 %v64_v56, %v62_v50  ;;  %v134_v17 = vmul.f32 %v465_v21, %v479_v24  ;;  %v136_v18 = vmul.f32 %v438_v13, %v483_v25 }
  0x1f   :  { %v311_v14 = vsub.f32 %v299_v52, %v309_v59  ;;  %v102_v61 = vadd.f32 %v100_v28, %v98_v45  ;;  %v170_v15 = vmul.f32 %v475_v23, %v487_v26  ;;  %v172_v31 = vmul.f32 %v470_v22, %v491_v27 }
  0x20   :  { %v241_v19 = vadd.f32 %v239_v9, %v205_v53  ;;  %v68_v62 = vadd.f32 %v66_v57, %v34_v60  ;;  %v138_v33 = vadd.f32 %v136_v18, %v134_v17  ;;  %v206_v20 = vmul.f32 %v520_v38, %v524_v41  ;;  %v793_v60 = vld [vmem:[#allocation2_spill] sm:$0xff] }
  0x21   :  { %v208_v24 = vmul.f32 %v515_v37, %v528_v42  ;;  %v242_v25 = vmul.f32 %v538_v44, %v542_v47  ;;  %v244_v36 = vmul.f32 %v533_v43, %v546_v48  ;;  %v174_v52 = vadd.f32 %v172_v31, %v170_v15 }
  0x22   :  { %v277_v16 = vadd.f32 %v275_v10, %v241_v19  ;;  %v104_v26 = vadd.f32 %v102_v61, %v68_v62  ;;  %v278_v27 = vmul.f32 %v565_v54, %v569_v55  ;;  %v280_v9 = vmul.f32 %v551_v49, %v577_v58 }
  0x23   :  { %v210_v50 = vadd.f32 %v208_v24, %v206_v20  ;;  %v246_v59 = vadd.f32 %v244_v36, %v242_v25  ;;  %v63_v42 = vmul.f32 %v596_v2, %v415_v6  ;;  %v314_v47 = vmul.f32 %v592_v1, %v601_v30  ;;  %v35_v2 = vld [vmem:[%s782_s5 + $0x8] sm:$0xff] }
  0x24   :  { %v313_v41 = vadd.f32 %v311_v14, %v277_v16  ;;  %v140_v56 = vadd.f32 %v138_v33, %v104_v26  ;;  %v65_v48 = vmul.f32 %v609_v34, %v410_v5  ;;  %v99_v10 = vmul.f32 %v433_v12, %v613_v35  ;;  %v794_v34 = vld [vmem:[#allocation3_spill] sm:$0xff]  ;;  %v795_v14 = vld [vmem:[#allocation4_spill] sm:$0xff] }
  0x25   :  { %v101_v55 = vmul.f32 %v428_v11, %v620_v4  ;;  %v316_v6 = vmul.f32 %v587_v0, %v793_v60  ;;  %v135_v5 = vmul.f32 %v465_v21, %v628_v51  ;;  %v137_v12 = vmul.f32 %v438_v13, %v636_v46 }
  0x26   :  { %324 = vst.msk [vmem:[%s781_s4 + $0x8] sm:$0xff] %vm23_vm0, %v313_v41  ;;  %v176_v58 = vadd.f32 %v174_v52, %v140_v56  ;;  %v67_v11 = vadd.f32 %v65_v48, %v63_v42  ;;  %v171_v35 = vmul.f32 %v475_v23, %v794_v34  ;;  %v173_v4 = vmul.f32 %v470_v22, %v645_v29 }
  0x27   :  { %v103_v30 = vadd.f32 %v101_v55, %v99_v10  ;;  %v282_v28 = vadd.f32 %v280_v9, %v278_v27  ;;  %v139_v57 = vadd.f32 %v137_v12, %v135_v5  ;;  %v207_v17 = vmul.f32 %v520_v38, %v653_v3 }
  0x28   :  { %v212_v45 = vadd.f32 %v210_v50, %v176_v58  ;;  %v69_v53 = vadd.f32 %v67_v11, %v35_v2  ;;  %v209_v21 = vmul.f32 %v515_v37, %v658_v40  ;;  %v318_v13 = vadd.f32 %v316_v6, %v314_v47 }
  0x29   :  { %v175_v18 = vadd.f32 %v173_v4, %v171_v35  ;;  %v243_v23 = vmul.f32 %v538_v44, %v664_v7  ;;  %v245_v22 = vmul.f32 %v533_v43, %v795_v14  ;;  %v279_v31 = vmul.f32 %v565_v54, %v677_v63 }
  0x2a   :  { %v248_v51 = vadd.f32 %v246_v59, %v212_v45  ;;  %v105_v46 = vadd.f32 %v103_v30, %v69_v53  ;;  %v211_v15 = vadd.f32 %v209_v21, %v207_v17  ;;  %v281_v38 = vmul.f32 %v551_v49, %v680_v39 }
  0x2b   :  { %v247_v40 = vadd.f32 %v245_v22, %v243_v23  ;;  %v315_v19 = vmul.f32 %v592_v1, %v683_v32  ;;  %v317_v44 = vmul.f32 %v587_v0, %v689_v8 }
  0x2c   :  { %v284_v29 = vadd.f32 %v282_v28, %v248_v51  ;;  %v141_v61 = vadd.f32 %v139_v57, %v105_v46  ;;  %v283_v7 = vadd.f32 %v281_v38, %v279_v31 }
  0x2d   :  { %v319_v63 = vadd.f32 %v317_v44, %v315_v19 }
  0x2e   :  { %v320_v37 = vadd.f32 %v318_v13, %v284_v29  ;;  %v177_v3 = vadd.f32 %v175_v18, %v141_v61 }
  0x30   :  { %325 = vst.msk [vmem:[%s782_s5] sm:$0xff] %vm23_vm0, %v320_v37  ;;  %v213_v43 = vadd.f32 %v211_v15, %v177_v3 }
  0x32   :  { %v249_v54 = vadd.f32 %v247_v40, %v213_v43 }
  0x34   :  { %v285_v62 = vadd.f32 %v283_v7, %v249_v54 }
  0x36   :  { %v321_v49 = vadd.f32 %v319_v63, %v285_v62 }
  0x38   :  { %326 = vst.msk [vmem:[%s782_s5 + $0x8] sm:$0xff] %vm23_vm0, %v321_v49 }

// kernel: reverse.6
= control target key start
LH: loop header
LB: loop body
LE: loop exit
PB: predicated region body
PF: predicated region fallthrough
CT: control target
= control target key end

     0   :  { %s584_s0 = inlined_call_operand.vmem [shape: f32[2,8,8,8,3], index: 0, kind: input, shape index: {}]   ;;  %s585_s1 = inlined_call_operand.vmem [shape: f32[2,8,8,8,3], index: 1, kind: output, shape index: {}]  }
   0x1   :  { %v192_v0 = vld [vmem:[%s584_s0 + $0x10] sm:$0xff]  ;;  %v195_v2 = vld [vmem:[%s584_s0 + $0x28] sm:$0xff]  ;;  %v199_v4 = vld [vmem:[%s584_s0 + $0x40] sm:$0xff] }
   0x2   :  { %v193_v1 = vld [vmem:[%s584_s0 + $0xd0] sm:$0xff]  ;;  %4 = vst [vmem:[%s585_s1] sm:$0xff] %v192_v0  ;;  %196 = vst [vmem:[%s585_s1 + $0x18] sm:$0xff] %v195_v2  ;;  %v197_v3 = vld [vmem:[%s584_s0 + $0xe8] sm:$0xff] }
   0x3   :  { %194 = vst [vmem:[%s585_s1 + $0xc0] sm:$0xff] %v193_v1  ;;  %v201_v5 = vld [vmem:[%s584_s0 + $0x100] sm:$0xff]  ;;  %198 = vst [vmem:[%s585_s1 + $0xd8] sm:$0xff] %v197_v3  ;;  %v203_v6 = vld [vmem:[%s584_s0 + $0x58] sm:$0xff] }
   0x4   :  { %200 = vst [vmem:[%s585_s1 + $0x30] sm:$0xff] %v199_v4  ;;  %202 = vst [vmem:[%s585_s1 + $0xf0] sm:$0xff] %v201_v5  ;;  %v205_v7 = vld [vmem:[%s584_s0 + $0x118] sm:$0xff]  ;;  %v207_v8 = vld [vmem:[%s584_s0 + $0x70] sm:$0xff] }
   0x5   :  { %204 = vst [vmem:[%s585_s1 + $0x48] sm:$0xff] %v203_v6  ;;  %206 = vst [vmem:[%s585_s1 + $0x108] sm:$0xff] %v205_v7  ;;  %v209_v9 = vld [vmem:[%s584_s0 + $0x130] sm:$0xff]  ;;  %v211_v10 = vld [vmem:[%s584_s0 + $0x88] sm:$0xff] }
   0x6   :  { %208 = vst [vmem:[%s585_s1 + $0x60] sm:$0xff] %v207_v8  ;;  %v213_v11 = vld [vmem:[%s584_s0 + $0x148] sm:$0xff]  ;;  %210 = vst [vmem:[%s585_s1 + $0x120] sm:$0xff] %v209_v9  ;;  %v215_v12 = vld [vmem:[%s584_s0 + $0xa0] sm:$0xff] }
   0x7   :  { %212 = vst [vmem:[%s585_s1 + $0x78] sm:$0xff] %v211_v10  ;;  %214 = vst [vmem:[%s585_s1 + $0x138] sm:$0xff] %v213_v11  ;;  %v217_v13 = vld [vmem:[%s584_s0 + $0x160] sm:$0xff]  ;;  %v219_v14 = vld [vmem:[%s584_s0 + $0xb8] sm:$0xff] }
   0x8   :  { %216 = vst [vmem:[%s585_s1 + $0x90] sm:$0xff] %v215_v12  ;;  %218 = vst [vmem:[%s585_s1 + $0x150] sm:$0xff] %v217_v13  ;;  %v221_v15 = vld [vmem:[%s584_s0 + $0x178] sm:$0xff]  ;;  %v223_v16 = vld [vmem:[%s584_s0 + $0x8] sm:$0xff] }
   0x9   :  { %220 = vst [vmem:[%s585_s1 + $0xa8] sm:$0xff] %v219_v14  ;;  %v225_v17 = vld [vmem:[%s584_s0 + $0xc8] sm:$0xff]  ;;  %222 = vst [vmem:[%s585_s1 + $0x168] sm:$0xff] %v221_v15  ;;  %v227_v18 = vld [vmem:[%s584_s0 + $0x20] sm:$0xff] }
   0xa   :  { %224 = vst [vmem:[%s585_s1 + $0x8] sm:$0xff] %v223_v16  ;;  %226 = vst [vmem:[%s585_s1 + $0xc8] sm:$0xff] %v225_v17  ;;  %v229_v19 = vld [vmem:[%s584_s0 + $0xe0] sm:$0xff]  ;;  %v231_v20 = vld [vmem:[%s584_s0 + $0x38] sm:$0xff] }
   0xb   :  { %228 = vst [vmem:[%s585_s1 + $0x20] sm:$0xff] %v227_v18  ;;  %230 = vst [vmem:[%s585_s1 + $0xe0] sm:$0xff] %v229_v19  ;;  %v233_v21 = vld [vmem:[%s584_s0 + $0xf8] sm:$0xff]  ;;  %v235_v22 = vld [vmem:[%s584_s0 + $0x50] sm:$0xff] }
   0xc   :  { %232 = vst [vmem:[%s585_s1 + $0x38] sm:$0xff] %v231_v20  ;;  %v237_v23 = vld [vmem:[%s584_s0 + $0x110] sm:$0xff]  ;;  %234 = vst [vmem:[%s585_s1 + $0xf8] sm:$0xff] %v233_v21  ;;  %v239_v24 = vld [vmem:[%s584_s0 + $0x68] sm:$0xff] }
   0xd   :  { %236 = vst [vmem:[%s585_s1 + $0x50] sm:$0xff] %v235_v22  ;;  %238 = vst [vmem:[%s585_s1 + $0x110] sm:$0xff] %v237_v23  ;;  %v241_v25 = vld [vmem:[%s584_s0 + $0x128] sm:$0xff]  ;;  %v243_v26 = vld [vmem:[%s584_s0 + $0x80] sm:$0xff] }
   0xe   :  { %240 = vst [vmem:[%s585_s1 + $0x68] sm:$0xff] %v239_v24  ;;  %242 = vst [vmem:[%s585_s1 + $0x128] sm:$0xff] %v241_v25  ;;  %v245_v27 = vld [vmem:[%s584_s0 + $0x140] sm:$0xff]  ;;  %v247_v28 = vld [vmem:[%s584_s0 + $0x98] sm:$0xff] }
   0xf   :  { %244 = vst [vmem:[%s585_s1 + $0x80] sm:$0xff] %v243_v26  ;;  %v249_v29 = vld [vmem:[%s584_s0 + $0x158] sm:$0xff]  ;;  %246 = vst [vmem:[%s585_s1 + $0x140] sm:$0xff] %v245_v27  ;;  %v251_v30 = vld [vmem:[%s584_s0 + $0xb0] sm:$0xff] }
  0x10   :  { %248 = vst [vmem:[%s585_s1 + $0x98] sm:$0xff] %v247_v28  ;;  %250 = vst [vmem:[%s585_s1 + $0x158] sm:$0xff] %v249_v29  ;;  %v253_v31 = vld [vmem:[%s584_s0 + $0x170] sm:$0xff]  ;;  %v129_v32 = vld [vmem:[%s584_s0] sm:$0xff] }
  0x11   :  { %252 = vst [vmem:[%s585_s1 + $0xb0] sm:$0xff] %v251_v30  ;;  %254 = vst [vmem:[%s585_s1 + $0x170] sm:$0xff] %v253_v31  ;;  %v256_v33 = vld [vmem:[%s584_s0 + $0xc0] sm:$0xff]  ;;  %v258_v34 = vld [vmem:[%s584_s0 + $0x18] sm:$0xff] }
  0x12   :  { %255 = vst [vmem:[%s585_s1 + $0x10] sm:$0xff] %v129_v32  ;;  %v260_v35 = vld [vmem:[%s584_s0 + $0xd8] sm:$0xff]  ;;  %257 = vst [vmem:[%s585_s1 + $0xd0] sm:$0xff] %v256_v33  ;;  %v262_v36 = vld [vmem:[%s584_s0 + $0x30] sm:$0xff] }
  0x13   :  { %259 = vst [vmem:[%s585_s1 + $0x28] sm:$0xff] %v258_v34  ;;  %261 = vst [vmem:[%s585_s1 + $0xe8] sm:$0xff] %v260_v35  ;;  %v264_v37 = vld [vmem:[%s584_s0 + $0xf0] sm:$0xff]  ;;  %v266_v38 = vld [vmem:[%s584_s0 + $0x48] sm:$0xff] }
  0x14   :  { %263 = vst [vmem:[%s585_s1 + $0x40] sm:$0xff] %v262_v36  ;;  %265 = vst [vmem:[%s585_s1 + $0x100] sm:$0xff] %v264_v37  ;;  %v268_v39 = vld [vmem:[%s584_s0 + $0x108] sm:$0xff]  ;;  %v270_v40 = vld [vmem:[%s584_s0 + $0x60] sm:$0xff] }
  0x15   :  { %267 = vst [vmem:[%s585_s1 + $0x58] sm:$0xff] %v266_v38  ;;  %v272_v41 = vld [vmem:[%s584_s0 + $0x120] sm:$0xff]  ;;  %269 = vst [vmem:[%s585_s1 + $0x118] sm:$0xff] %v268_v39  ;;  %v274_v42 = vld [vmem:[%s584_s0 + $0x78] sm:$0xff] }
  0x16   :  { %271 = vst [vmem:[%s585_s1 + $0x70] sm:$0xff] %v270_v40  ;;  %273 = vst [vmem:[%s585_s1 + $0x130] sm:$0xff] %v272_v41  ;;  %v276_v43 = vld [vmem:[%s584_s0 + $0x138] sm:$0xff]  ;;  %v278_v44 = vld [vmem:[%s584_s0 + $0x90] sm:$0xff] }
  0x17   :  { %275 = vst [vmem:[%s585_s1 + $0x88] sm:$0xff] %v274_v42  ;;  %277 = vst [vmem:[%s585_s1 + $0x148] sm:$0xff] %v276_v43  ;;  %v280_v45 = vld [vmem:[%s584_s0 + $0x150] sm:$0xff]  ;;  %v282_v46 = vld [vmem:[%s584_s0 + $0xa8] sm:$0xff] }
  0x18   :  { %279 = vst [vmem:[%s585_s1 + $0xa0] sm:$0xff] %v278_v44  ;;  %v284_v47 = vld [vmem:[%s584_s0 + $0x168] sm:$0xff]  ;;  %281 = vst [vmem:[%s585_s1 + $0x160] sm:$0xff] %v280_v45 }
  0x19   :  { %283 = vst [vmem:[%s585_s1 + $0xb8] sm:$0xff] %v282_v46  ;;  %285 = vst [vmem:[%s585_s1 + $0x178] sm:$0xff] %v284_v47 }

// kernel: _lambda_.10
= control target key start
LH: loop header
LB: loop body
LE: loop exit
PB: predicated region body
PF: predicated region fallthrough
CT: control target
= control target key end

     0   :  { %s687_s15 = smov 0   ;;  %s689_s16 = smov 0   ;;  %s734_s0 = inlined_call_operand.vmem [shape: f32[2,8,512], index: 0, kind: input, shape index: {}]   ;;  %s735_s1 = inlined_call_operand.vmem [shape: f32[8,8], index: 1, kind: input, shape index: {}]   ;;  %s736_s2 = inlined_call_operand.vmem [shape: f32[8,1], index: 2, kind: input, shape index: {}]   ;;  %s737_s3 = inlined_call_operand.vmem [shape: f32[2,8,512], index: 3, kind: input, shape index: {}]   ;;  %s738_s4 = inlined_call_operand.vmem [shape: f32[2,8,512], index: 4, kind: output, shape index: {}]  }
   0x1   :  { %s691_s17 = smov 0  }
   0x2 LB: > { %s26_s18 = sadd.s32 1, %s654_s16  ;;  %p587_p0 = scmp.ge.s32.totalorder %s658_s17, 1  ;;  %s658_s17 = sphi %s691_s17, %s14_s17   ;;  %s654_s16 = sphi %s689_s16, %s740_s16   ;;  %s650_s15 = sphi %s687_s15, %s739_s15  }
   0x3   : > { %p28_p1 = scmp.ge.s32.totalorder %s26_s18, 2  ;;  %p200_p2 = scmp.lt.s32.totalorder %s658_s17, 3 }
   0x5   : > { %s742_s18 = smov (%p28_p1, %s26_s18), 0  ;;  %p201_p3 = pnand %p587_p0, %p200_p2 }
   0x6   : > { %p244_p4 = scmp.lt.s32.totalorder (!%p201_p3), %s650_s15, 1  ;;  %v278_v0 = vld [vmem:[%s736_s2] sm:$0xff] (!%p201_p3)  ;;  %v660_v1 = vmov (!%p201_p3), 0.0   ;;  %v661_v2 = vmov (!%p201_p3), 0   ;;  %vm284_vm0 = vcmask (!%p201_p3), 64512  }
   0x7   : > { %204 = sbr.rel (%p201_p3) target bundleno = 265 (0x109), region = 36  ;;  %352 = vmatprep.mubr.f32.mxu0 (!%p201_p3), %v660_v1  ;;  %423 = vmatprep.mubr.f32.mxu1 (!%p201_p3), %v660_v1  ;;  %v273_v3 = vld [vmem:[%s735_s1] sm:$0xff] (!%p201_p3) }
   0x8   : > { %627 = vset.pattern.permute.xlu0 (!%p201_p3), %v661_v2 }
   0x9   : > { %281 = vperm.xlu0 (!%p201_p3), %627, %v278_v0  }
   0xe   : > { %s744_s15 = smov (!%p244_p4, %s650_s15), 1 }
   0xf   : > { %s708_s21 = sshll.u32 %s744_s15, 5 }
  0x10   : > { %s251_s24 = scalar_lea.vmem %s734_s0, %s708_s21  ;;  %s261_s29 = scalar_lea.vmem %s737_s3, %s708_s21 }
  0x11   : > { %v275_v4 = vld [vmem:[%s251_s24 + $0x8] sm:$0xff]  ;;  %v277_v5 = vld [vmem:[%s251_s24 + $0x18] sm:$0xff]  ;;  %v274_v6 = vld [vmem:[%s251_s24] sm:$0xff]  ;;  %s271_s6 = scalar_lea.vmem %s738_s4, %s708_s21 }
  0x12   : > { %288 = vmatprep.subr.mxu0 %v275_v4  ;;  %359 = vmatprep.subr.mxu1 %v277_v5  ;;  %v276_v7 = vld [vmem:[%s251_s24 + $0x10] sm:$0xff]  ;;  %v430_v10 = vld [vmem:[%s261_s29] sm:$0xff]  ;;  %v431_v16 = vld [vmem:[%s261_s29 + $0x8] sm:$0xff] }
  0x13   : > { %289 = vmatpush1.msra.mxu0 %v274_v6  ;;  %360 = vmatpush1.msra.mxu1 %v276_v7  ;;  %v432_v12 = vld [vmem:[%s261_s29 + $0x10] sm:$0xff]  ;;  %v433_v18 = vld [vmem:[%s261_s29 + $0x18] sm:$0xff] }
  0x14   : > { %594 = vmatmul.mubr.msk.f32.vlgmr.msra.gmra.mrb[0].mxu0 %vm284_vm0, %v273_v3  ;;  %595 = vmatmul.mubr.msk.f32.vlgmr.msra.gmra.mrb[0].mxu1 %vm284_vm0, %v273_v3 }
  0x88   : > { %v282_v8 = vpop.permute.xlu0 %281 }
  0xe7   : > { %v354_v9 = vpop.f32.mrb[0].mxu0  ;;  %v425_v11 = vpop.f32.mrb[0].mxu1 }
  0xe8   : > { %v355_v13 = vadd.f32 %v354_v9, %v282_v8  ;;  %v426_v14 = vadd.f32 %v425_v11, %v282_v8  ;;  %v356_v15 = vpop.f32.mrb[1].mxu0  ;;  %v427_v17 = vpop.f32.mrb[1].mxu1 }
  0xe9   : > { %v357_v19 = vadd.f32 %v356_v15, %v282_v8  ;;  %v428_v20 = vadd.f32 %v427_v17, %v282_v8 }
  0xea   : > { %v434_v21 = vadd.f32 %v430_v10, %v355_v13  ;;  %v436_v22 = vadd.f32 %v432_v12, %v426_v14 }
  0xeb   : > { %v435_v23 = vadd.f32 %v431_v16, %v357_v19  ;;  %v437_v24 = vadd.f32 %v433_v18, %v428_v20 }
  0xec   : > { %v442_v25 = vmul.f32 0.044715, %v434_v21  ;;  %v444_v26 = vmul.f32 0.044715, %v436_v22  ;;  %v438_v47 = vmul.f32 0.5, %v434_v21  ;;  %v440_v50 = vmul.f32 0.5, %v436_v22 }
  0xed   : > { %v443_v27 = vmul.f32 0.044715, %v435_v23  ;;  %v445_v28 = vmul.f32 0.044715, %v437_v24  ;;  %v439_v54 = vmul.f32 0.5, %v435_v23  ;;  %v441_v57 = vmul.f32 0.5, %v437_v24 }
  0xee   : > { %v446_v29 = vmul.f32 %v442_v25, %v434_v21  ;;  %v448_v30 = vmul.f32 %v444_v26, %v436_v22 }
  0xef   : > { %v447_v31 = vmul.f32 %v443_v27, %v435_v23  ;;  %v449_v32 = vmul.f32 %v445_v28, %v437_v24 }
  0xf0   : > { %v450_v33 = vmul.f32 %v446_v29, %v434_v21  ;;  %v452_v34 = vmul.f32 %v448_v30, %v436_v22 }
  0xf1   : > { %v451_v35 = vmul.f32 %v447_v31, %v435_v23  ;;  %v453_v36 = vmul.f32 %v449_v32, %v437_v24 }
  0xf2   : > { %v454_v37 = vadd.f32 %v450_v33, %v434_v21  ;;  %v456_v38 = vadd.f32 %v452_v34, %v436_v22 }
  0xf3   : > { %v455_v39 = vadd.f32 %v451_v35, %v435_v23  ;;  %v457_v40 = vadd.f32 %v453_v36, %v437_v24 }
  0xf4   : > { %v458_v41 = vmul.f32 0.7978846, %v454_v37  ;;  %v460_v42 = vmul.f32 0.7978846, %v456_v38 }
  0xf5   : > { %v459_v43 = vmul.f32 0.7978846, %v455_v39  ;;  %v461_v44 = vmul.f32 0.7978846, %v457_v40 }
  0xf6   : > { %628 = vtanh.f32 %v458_v41 }
  0xf7   : > { %630 = vtanh.f32 %v460_v42 }
  0xf8   : > { %632 = vtanh.f32 %v459_v43 }
  0xf9   : > { %634 = vtanh.f32 %v461_v44 }
 0x100   : > { %v629_v45 = vpop.eup %628 }
 0x101   : > { %v631_v46 = vpop.eup %630  ;;  %v466_v48 = vadd.f32 1.0, %v629_v45 }
 0x102   : > { %v633_v49 = vpop.eup %632  ;;  %v468_v51 = vadd.f32 1.0, %v631_v46 }
 0x103   : > { %v635_v52 = vpop.eup %634  ;;  %v470_v53 = vmul.f32 %v466_v48, %v438_v47  ;;  %v467_v55 = vadd.f32 1.0, %v633_v49 }
 0x104   : > { %v472_v56 = vmul.f32 %v468_v51, %v440_v50  ;;  %v469_v58 = vadd.f32 1.0, %v635_v52 }
 0x105   : > { %474 = vst [vmem:[%s271_s6] sm:$0xff] %v470_v53  ;;  %v471_v59 = vmul.f32 %v467_v55, %v439_v54 }
 0x106   : > { %476 = vst [vmem:[%s271_s6 + $0x10] sm:$0xff] %v472_v56  ;;  %v473_v60 = vmul.f32 %v469_v58, %v441_v57 }
 0x107   : > { %475 = vst [vmem:[%s271_s6 + $0x8] sm:$0xff] %v471_v59 }
 0x108   : > { %477 = vst [vmem:[%s271_s6 + $0x18] sm:$0xff] %v473_v60 }
 0x109 PF: > { %s14_s17 = sadd.s32 1, %s658_s17   ;;  %s739_s15 = smov %s654_s16 }
 0x10a   : > { %p11_p5 = scmp.ge.s32.totalorder %s14_s17, 4   ;;  %s740_s16 = smov %s742_s18 }
 0x10c   :  { %13 = sbr.rel (!%p11_p5) target bundleno = 2 (0x2), region = 69 }

// kernel: _lambda_.14
= control target key start
LH: loop header
LB: loop body
LE: loop exit
PB: predicated region body
PF: predicated region fallthrough
CT: control target
= control target key end

     0   :  { %s643_s15 = smov 0   ;;  %s645_s16 = smov 0   ;;  %s685_s0 = inlined_call_operand.vmem [shape: f32[2,8,512], index: 0, kind: input, shape index: {}]   ;;  %s686_s1 = inlined_call_operand.vmem [shape: f32[8,8], index: 1, kind: input, shape index: {}]   ;;  %s687_s2 = inlined_call_operand.vmem [shape: f32[8,1], index: 2, kind: input, shape index: {}]   ;;  %s688_s3 = inlined_call_operand.vmem [shape: f32[2,8,512], index: 3, kind: input, shape index: {}]   ;;  %s689_s4 = inlined_call_operand.vmem [shape: f32[2,8,512], index: 4, kind: output, shape index: {}]  }
   0x1   :  { %s647_s17 = smov 0  }
   0x2 LB: > { %s26_s18 = sadd.s32 1, %s610_s16  ;;  %p551_p0 = scmp.ge.s32.totalorder %s614_s17, 1  ;;  %s614_s17 = sphi %s647_s17, %s14_s17   ;;  %s610_s16 = sphi %s645_s16, %s691_s16   ;;  %s606_s15 = sphi %s643_s15, %s690_s15  }
   0x3   : > { %p28_p1 = scmp.ge.s32.totalorder %s26_s18, 2  ;;  %p200_p2 = scmp.lt.s32.totalorder %s614_s17, 3 }
   0x5   : > { %s693_s18 = smov (%p28_p1, %s26_s18), 0  ;;  %p201_p3 = pnand %p551_p0, %p200_p2 }
   0x6   : > { %p244_p4 = scmp.lt.s32.totalorder (!%p201_p3), %s606_s15, 1  ;;  %v278_v0 = vld [vmem:[%s687_s2] sm:$0xff] (!%p201_p3)  ;;  %v616_v1 = vmov (!%p201_p3), 0.0   ;;  %v617_v2 = vmov (!%p201_p3), 0   ;;  %vm284_vm0 = vcmask (!%p201_p3), 64512  }
   0x7   : > { %204 = sbr.rel (%p201_p3) target bundleno = 238 (0xee), region = 36  ;;  %352 = vmatprep.mubr.f32.mxu0 (!%p201_p3), %v616_v1  ;;  %423 = vmatprep.mubr.f32.mxu1 (!%p201_p3), %v616_v1  ;;  %v273_v3 = vld [vmem:[%s686_s1] sm:$0xff] (!%p201_p3) }
   0x8   : > { %591 = vset.pattern.permute.xlu0 (!%p201_p3), %v617_v2 }
   0x9   : > { %281 = vperm.xlu0 (!%p201_p3), %591, %v278_v0  }
   0xe   : > { %s695_s15 = smov (!%p244_p4, %s606_s15), 1 }
   0xf   : > { %s562_s21 = sshll.u32 %s695_s15, 5 }
  0x10   : > { %s251_s24 = scalar_lea.vmem %s685_s0, %s562_s21  ;;  %s261_s29 = scalar_lea.vmem %s688_s3, %s562_s21 }
  0x11   : > { %v275_v4 = vld [vmem:[%s251_s24 + $0x8] sm:$0xff]  ;;  %v277_v5 = vld [vmem:[%s251_s24 + $0x18] sm:$0xff]  ;;  %v274_v6 = vld [vmem:[%s251_s24] sm:$0xff]  ;;  %s271_s6 = scalar_lea.vmem %s689_s4, %s562_s21 }
  0x12   : > { %288 = vmatprep.subr.mxu0 %v275_v4  ;;  %359 = vmatprep.subr.mxu1 %v277_v5  ;;  %v276_v7 = vld [vmem:[%s251_s24 + $0x10] sm:$0xff]  ;;  %v430_v10 = vld [vmem:[%s261_s29] sm:$0xff]  ;;  %v431_v16 = vld [vmem:[%s261_s29 + $0x8] sm:$0xff] }
  0x13   : > { %289 = vmatpush1.msra.mxu0 %v274_v6  ;;  %360 = vmatpush1.msra.mxu1 %v276_v7  ;;  %v432_v12 = vld [vmem:[%s261_s29 + $0x10] sm:$0xff]  ;;  %v433_v18 = vld [vmem:[%s261_s29 + $0x18] sm:$0xff] }
  0x14   : > { %558 = vmatmul.mubr.msk.f32.vlgmr.msra.gmra.mrb[0].mxu0 %vm284_vm0, %v273_v3  ;;  %559 = vmatmul.mubr.msk.f32.vlgmr.msra.gmra.mrb[0].mxu1 %vm284_vm0, %v273_v3 }
  0x88   : > { %v282_v8 = vpop.permute.xlu0 %281 }
  0xe7   : > { %v354_v9 = vpop.f32.mrb[0].mxu0  ;;  %v425_v11 = vpop.f32.mrb[0].mxu1 }
  0xe8   : > { %v355_v13 = vadd.f32 %v354_v9, %v282_v8  ;;  %v426_v14 = vadd.f32 %v425_v11, %v282_v8  ;;  %v356_v15 = vpop.f32.mrb[1].mxu0  ;;  %v427_v17 = vpop.f32.mrb[1].mxu1 }
  0xe9   : > { %v357_v19 = vadd.f32 %v356_v15, %v282_v8  ;;  %v428_v20 = vadd.f32 %v427_v17, %v282_v8 }
  0xea   : > { %v434_v21 = vadd.f32 %v430_v10, %v355_v13  ;;  %v436_v22 = vadd.f32 %v432_v12, %v426_v14 }
  0xeb   : > { %v435_v23 = vadd.f32 %v431_v16, %v357_v19  ;;  %v437_v24 = vadd.f32 %v433_v18, %v428_v20 }
  0xec   : > { %438 = vst [vmem:[%s271_s6] sm:$0xff] %v434_v21  ;;  %440 = vst [vmem:[%s271_s6 + $0x10] sm:$0xff] %v436_v22 }
  0xed   : > { %439 = vst [vmem:[%s271_s6 + $0x8] sm:$0xff] %v435_v23  ;;  %441 = vst [vmem:[%s271_s6 + $0x18] sm:$0xff] %v437_v24 }
  0xee PF: > { %s14_s17 = sadd.s32 1, %s614_s17   ;;  %s690_s15 = smov %s610_s16 }
  0xef   : > { %p11_p5 = scmp.ge.s32.totalorder %s14_s17, 4   ;;  %s691_s16 = smov %s693_s18 }
  0xf1   :  { %13 = sbr.rel (!%p11_p5) target bundleno = 2 (0x2), region = 69 }

// kernel: _lambda_.15
= control target key start
LH: loop header
LB: loop body
LE: loop exit
PB: predicated region body
PF: predicated region fallthrough
CT: control target
= control target key end

     0   :  { %s917_s20 = smov 0   ;;  %s919_s21 = smov 0   ;;  %s1004_s0 = inlined_call_operand.vmem [shape: f32[2,8,512], index: 0, kind: input, shape index: {}]   ;;  %s1005_s1 = inlined_call_operand.vmem [shape: f32[16,8], index: 1, kind: input, shape index: {}]   ;;  %s1006_s2 = inlined_call_operand.vmem [shape: f32[16,1], index: 2, kind: input, shape index: {}]   ;;  %s1007_s3 = inlined_call_operand.vmem [shape: f32[1,16], index: 3, kind: input, shape index: {}]   ;;  %s1008_s4 = inlined_call_operand.<no memory space> [shape: f32[1,1], index: 4, kind: input, shape index: {}]   ;;  %s1009_s5 = inlined_call_operand.vmem [shape: f32[2,1,512], index: 5, kind: output, shape index: {}]  }
   0x1   :  { %v10_v0 = vstv %s1008_s4  ;;  %s921_s22 = smov 0  }
   0x2   :  { %11 = vst [vmem:[#allocation2] sm:$0x1] %v10_v0 }
   0x3 LB: > { %s29_s4 = sadd.s32 1, %s875_s21  ;;  %p791_p0 = scmp.ge.s32.totalorder %s879_s22, 1  ;;  %s879_s22 = sphi %s921_s22, %s17_s22   ;;  %s875_s21 = sphi %s919_s21, %s1011_s21   ;;  %s871_s20 = sphi %s917_s20, %s1010_s20  }
   0x4   : > { %p31_p1 = scmp.ge.s32.totalorder %s29_s4, 2  ;;  %p210_p2 = scmp.lt.s32.totalorder %s879_s22, 3 }
   0x6   : > { %s1013_s4 = smov (%p31_p1, %s29_s4), 0  ;;  %p211_p3 = pnand %p791_p0, %p210_p2 }
   0x7   : > { %p246_p4 = scmp.lt.s32.totalorder (!%p211_p3), %s871_s20, 1  ;;  %v881_v1 = vmov (!%p211_p3), 0.0   ;;  %v270_v2 = vld [vmem:[%s1006_s2] sm:$0xff] (!%p211_p3)  ;;  %v882_v3 = vmov (!%p211_p3), 0   ;;  %vm282_vm0 = vcmask (!%p211_p3), 64512   ;;  %v271_v9 = vld [vmem:[%s1006_s2 + $0x8] sm:$0xff] (!%p211_p3) }
   0x8   : > { %214 = sbr.rel (%p211_p3) target bundleno = 498 (0x1f2), region = 40  ;;  %353 = vmatprep.mubr.f32.mxu0 (!%p211_p3), %v881_v1  ;;  %430 = vmatprep.mubr.f32.mxu1 (!%p211_p3), %v881_v1  ;;  %v264_v4 = vld [vmem:[%s1005_s1] sm:$0xff] (!%p211_p3)  ;;  %v265_v10 = vld [vmem:[%s1005_s1 + $0x8] sm:$0xff] (!%p211_p3)  ;;  %vm526_vm1 = vcmask (!%p211_p3), 130048  }
   0x9   : > { %839 = vset.pattern.permute.xlu0 (!%p211_p3), %v882_v3  ;;  %840 = vset.pattern.permute.xlu1 (!%p211_p3), %v882_v3  ;;  %v516_v11 = vld [vmem:[#allocation2] sm:$0x1] (!%p211_p3) }
   0xa   : > { %274 = vperm.xlu0 (!%p211_p3), %839, %v270_v2   ;;  %519 = vperm.xlu1 (!%p211_p3), %840, %v516_v11  }
   0xe   : > { %279 = vperm.xlu0 (!%p211_p3), %839, %v271_v9  }
   0xf   : > { %s1015_s20 = smov (!%p246_p4, %s871_s20), 1 }
  0x10   : > { %s803_s25 = sshll.u32 %s1015_s20, 5  ;;  %s794_s12 = sshll.u32 %s1015_s20, 2 }
  0x11   : > { %s253_s28 = scalar_lea.vmem %s1004_s0, %s803_s25  ;;  %s262_s15 = scalar_lea.vmem %s1009_s5, %s794_s12 }
  0x12   : > { %v267_v5 = vld [vmem:[%s253_s28 + $0x8] sm:$0xff]  ;;  %v269_v6 = vld [vmem:[%s253_s28 + $0x18] sm:$0xff]  ;;  %v266_v7 = vld [vmem:[%s253_s28] sm:$0xff] }
  0x13   : > { %289 = vmatprep.subr.mxu0 %v267_v5  ;;  %366 = vmatprep.subr.mxu1 %v269_v6  ;;  %v268_v8 = vld [vmem:[%s253_s28 + $0x10] sm:$0xff] }
  0x14   : > { %290 = vmatpush1.msra.mxu0 %v266_v7  ;;  %367 = vmatpush1.msra.mxu1 %v268_v8 }
  0x15   : > { %795 = vmatmul.mubr.msk.f32.vlgmr.msra.gmra.mrb[0].mxu0 %vm282_vm0, %v264_v4  ;;  %797 = vmatmul.mubr.msk.f32.vlgmr.msra.gmra.mrb[0].mxu1 %vm282_vm0, %v264_v4 }
  0x16   : > { %359 = vmatprep.mubr.f32.mxu0 %v881_v1  ;;  %436 = vmatprep.mubr.f32.mxu1 %v881_v1 }
  0x19   : > { %796 = vmatmul.mubr.msk.f32.gmra.mrb[2].mxu0 %vm282_vm0, %v265_v10  ;;  %798 = vmatmul.mubr.msk.f32.gmra.mrb[2].mxu1 %vm282_vm0, %v265_v10 }
  0x1a   : > { %594 = vmatprep.mubr.f32.mxu0 %v881_v1  ;;  %665 = vmatprep.mubr.f32.mxu1 %v881_v1 }
  0x89   : > { %v275_v12 = vpop.permute.xlu0 %274 }
  0x8d   : > { %v280_v23 = vpop.permute.xlu0 %279 }
  0xe8   : > { %v355_v13 = vpop.f32.mrb[0].mxu0  ;;  %v432_v14 = vpop.f32.mrb[0].mxu1 }
  0xe9   : > { %v953_v15 = vadd.f32 %v355_v13, %v275_v12  ;;  %v955_v16 = vadd.f32 %v432_v14, %v275_v12  ;;  %v357_v17 = vpop.f32.mrb[1].mxu0  ;;  %v434_v18 = vpop.f32.mrb[1].mxu1 }
  0xea   : > { %v957_v19 = vadd.f32 %v357_v17, %v275_v12  ;;  %v959_v20 = vadd.f32 %v434_v18, %v275_v12 }
  0xeb   : > { %v451_v21 = vmul.f32 0.044715, %v953_v15  ;;  %v453_v22 = vmul.f32 0.044715, %v955_v16  ;;  %v443_v11 = vmul.f32 0.5, %v953_v15 }
  0xec   : > { %v452_v24 = vmul.f32 0.044715, %v957_v19  ;;  %v454_v25 = vmul.f32 0.044715, %v959_v20  ;;  %v361_v26 = vpop.f32.mrb[2].mxu0  ;;  %v438_v27 = vpop.f32.mrb[2].mxu1 }
  0xed   : > { %v459_v28 = vmul.f32 %v451_v21, %v953_v15  ;;  %v461_v29 = vmul.f32 %v453_v22, %v955_v16  ;;  %v362_v30 = vadd.f32 %v361_v26, %v280_v23  ;;  %v439_v31 = vadd.f32 %v438_v27, %v280_v23  ;;  %v363_v32 = vpop.f32.mrb[3].mxu0  ;;  %v440_v33 = vpop.f32.mrb[3].mxu1 }
  0xee   : > { %v460_v34 = vmul.f32 %v452_v24, %v957_v19  ;;  %v462_v35 = vmul.f32 %v454_v25, %v959_v20  ;;  %v364_v36 = vadd.f32 %v363_v32, %v280_v23  ;;  %v969_v37 = vadd.f32 %v440_v33, %v280_v23 }
  0xef   : > { %v467_v38 = vmul.f32 %v459_v28, %v953_v15  ;;  %v469_v39 = vmul.f32 %v461_v29, %v955_v16  ;;  %v455_v40 = vmul.f32 0.044715, %v362_v30  ;;  %v457_v41 = vmul.f32 0.044715, %v439_v31 }
  0xf0   : > { %v468_v42 = vmul.f32 %v460_v34, %v957_v19  ;;  %v456_v43 = vmul.f32 0.044715, %v364_v36  ;;  %v458_v44 = vmul.f32 0.044715, %v969_v37  ;;  %v470_v49 = vmul.f32 %v462_v35, %v959_v20 }
  0xf1   : > { %v475_v45 = vadd.f32 %v467_v38, %v953_v15  ;;  %v477_v46 = vadd.f32 %v469_v39, %v955_v16  ;;  %v463_v47 = vmul.f32 %v455_v40, %v362_v30  ;;  %v465_v48 = vmul.f32 %v457_v41, %v439_v31 }
  0xf2   : > { %v464_v50 = vmul.f32 %v456_v43, %v364_v36  ;;  %v466_v51 = vmul.f32 %v458_v44, %v969_v37  ;;  %v476_v58 = vadd.f32 %v468_v42, %v957_v19  ;;  %v478_v63 = vadd.f32 %v470_v49, %v959_v20 }
  0xf3   : > { %v483_v52 = vmul.f32 0.7978846, %v475_v45  ;;  %v485_v53 = vmul.f32 0.7978846, %v477_v46  ;;  %v471_v54 = vmul.f32 %v463_v47, %v362_v30  ;;  %v473_v55 = vmul.f32 %v465_v48, %v439_v31  ;;  %v520_v48 = vpop.permute.xlu1 %519 }
  0xf4   : > { %v472_v56 = vmul.f32 %v464_v50, %v364_v36  ;;  %v474_v57 = vmul.f32 %v466_v51, %v969_v37  ;;  %v484_v62 = vmul.f32 0.7978846, %v476_v58  ;;  %v486_v4 = vmul.f32 0.7978846, %v478_v63 }
  0xf5   : > { %841 = vtanh.f32 %v483_v52  ;;  %v479_v59 = vadd.f32 %v471_v54, %v362_v30  ;;  %v481_v60 = vadd.f32 %v473_v55, %v439_v31  ;;  %v447_v17 = vmul.f32 0.5, %v362_v30 }
  0xf6   : > { %843 = vtanh.f32 %v485_v53  ;;  %v480_v61 = vadd.f32 %v472_v56, %v364_v36  ;;  %v482_v2 = vadd.f32 %v474_v57, %v969_v37  ;;  %v445_v21 = vmul.f32 0.5, %v955_v16 }
  0xf7   : > { %v487_v0 = vmul.f32 0.7978846, %v479_v59  ;;  %v489_v1 = vmul.f32 0.7978846, %v481_v60  ;;  %845 = vtanh.f32 %v484_v62  ;;  %v444_v23 = vmul.f32 0.5, %v957_v19 }
  0xf8   : > { %v488_v3 = vmul.f32 0.7978846, %v480_v61  ;;  %v490_v5 = vmul.f32 0.7978846, %v482_v2  ;;  %v448_v24 = vmul.f32 0.5, %v364_v36  ;;  %v449_v25 = vmul.f32 0.5, %v439_v31 }
  0xf9   : > { %847 = vtanh.f32 %v487_v0  ;;  %v446_v29 = vmul.f32 0.5, %v959_v20  ;;  %v450_v34 = vmul.f32 0.5, %v969_v37  ;;  %v515_v20 = vld [vmem:[%s1007_s3] sm:$0x1]  ;;  %v522_v37 = vlaneseq }
  0xfa   : > { %849 = vtanh.f32 %v489_v1  ;;  %v883_v46 = vmov 1966171168  }
  0xfb   : > { %851 = vtanh.f32 %v488_v3  ;;  %v523_v44 = vshrl.u32 %v522_v37, 7  ;;  %v679_v47 = vunpack.c.l.s4 %v883_v46  ;;  %vm703_vm2 = vcmp.lt.s32.totalorder %v522_v37, 512 }
  0xfc   : > { %853 = vtanh.f32 %v486_v4 }
  0xfd   : > { %855 = vtanh.f32 %v490_v5  ;;  %v524_v45 = vsub.s32 0, %v523_v44  ;;  %v680_v50 = vunpack.c.0.s8 %v679_v47 }
  0xff   : > { %v842_v6 = vpop.eup %841  ;;  %v525_v49 = vrot.slane %v520_v48, %v524_v45  ;;  %v683_v54 = vsub.s32 %v680_v50, %v523_v44 }
 0x100   : > { %v844_v7 = vpop.eup %843  ;;  %v499_v9 = vadd.f32 1.0, %v842_v6 }
 0x101   : > { %v846_v8 = vpop.eup %845  ;;  %v501_v12 = vadd.f32 1.0, %v844_v7 }
 0x102   : > { %v500_v14 = vadd.f32 1.0, %v846_v8  ;;  %v507_v32 = vmul.f32 %v499_v9, %v443_v11 }
 0x103   : > { %v848_v10 = vpop.eup %847  ;;  %v509_v30 = vmul.f32 %v501_v12, %v445_v21 }
 0x104   : > { %v850_v13 = vpop.eup %849  ;;  %v503_v18 = vadd.f32 1.0, %v848_v10  ;;  %v508_v39 = vmul.f32 %v500_v14, %v444_v23 }
 0x105   : > { %v852_v22 = vpop.eup %851  ;;  %v505_v26 = vadd.f32 1.0, %v850_v13 }
 0x106   : > { %v854_v27 = vpop.eup %853  ;;  %v504_v28 = vadd.f32 1.0, %v852_v22  ;;  %v511_v33 = vmul.f32 %v503_v18, %v447_v17 }
 0x107   : > { %v856_v15 = vpop.eup %855  ;;  %v502_v35 = vadd.f32 1.0, %v854_v27  ;;  %v513_v38 = vmul.f32 %v505_v26, %v449_v25 }
 0x108   : > { %v512_v16 = vmul.f32 %v504_v28, %v448_v24  ;;  %v506_v40 = vadd.f32 1.0, %v856_v15  ;;  %v806_v41 = vpack.c.bf16 %v511_v33, %v507_v32 }
 0x109   : > { %v810_v19 = vpack.c.bf16 %v513_v38, %v509_v30  ;;  %v510_v31 = vmul.f32 %v502_v35, %v446_v29 }
 0x10a   : > { %v804_v36 = vpack.c.bf16 %v512_v16, %v508_v39  ;;  %v514_v42 = vmul.f32 %v506_v40, %v450_v34 }
 0x10c   : > { %805 = vmatprep.subr.bf16.mxu0 %v804_v36  ;;  %v808_v43 = vpack.c.bf16 %v514_v42, %v510_v31 }
 0x10d   : > { %807 = vmatpush1.bf16.msra.mxu0 %v806_v41 }
 0x10e   : > { %809 = vmatprep.subr.bf16.mxu1 %v808_v43 }
 0x10f   : > { %811 = vmatpush1.bf16.msra.mxu1 %v810_v19 }
 0x110   : > { %799 = vmatmul.mubr.msk.f32.vlgmr.msra.gmra.mrb[4].mxu0 %vm526_vm1, %v515_v20 }
 0x112   : > { %800 = vmatmul.mubr.msk.f32.vlgmr.msra.gmra.mrb[4].mxu1 %vm526_vm1, %v515_v20 }
 0x1e3   : > { %v596_v51 = vpop.f32.mrb[4].mxu0 }
 0x1e4   : > { %v597_v52 = vadd.f32 %v596_v51, %v525_v49  ;;  %v598_v53 = vpop.f32.mrb[5].mxu0 }
 0x1e5   : > { %v667_v55 = vpop.f32.mrb[4].mxu1  ;;  %v599_v56 = vadd.f32 %v598_v53, %v525_v49 }
 0x1e6   : > { %v668_v57 = vadd.f32 %v667_v55, %v525_v49  ;;  %v669_v58 = vpop.f32.mrb[5].mxu1 }
 0x1e7   : > { %v676_v59 = vcombine.low %v597_v52, %v599_v56  ;;  %v670_v60 = vadd.f32 %v669_v58, %v525_v49 }
 0x1e9   : > { %v684_v61 = vrot.slane %v676_v59, %v683_v54  ;;  %v677_v62 = vcombine.low %v668_v57, %v670_v60 }
 0x1eb   : > { %v691_v63 = vrot.slane %v677_v62, %v683_v54 }
 0x1ed   : > { %v692_v0 = vcombine.low %v684_v61, %v691_v63 }
 0x1ef   : > { %v699_v1 = vrot.slane %v692_v0, %v683_v54 }
 0x1f1   : > { %705 = vst.msk [vmem:[%s262_s15] sm:$0xf] %vm703_vm2, %v699_v1 }
 0x1f2 PF: > { %s17_s22 = sadd.s32 1, %s879_s22   ;;  %s1010_s20 = smov %s875_s21 }
 0x1f3   : > { %p14_p5 = scmp.ge.s32.totalorder %s17_s22, 4   ;;  %s1011_s21 = smov %s1013_s4 }
 0x1f5   :  { %16 = sbr.rel (!%p14_p5) target bundleno = 3 (0x3), region = 70 }

</bundles_post_ra>
